<compile_context>
chip_gen: v7x
topology: tpu7x:2x2x1
jax: 0.10.0
libtpu: 0.0.40
codegen_flags: <defaults>
</compile_context>

<pallas_src>
import functools

import jax
import jax.numpy as jnp
from jax import lax
from jax.experimental import pallas as pl
from jax.experimental.pallas import tpu as pltpu


def _spatial_attention_kernel(w_ref, x_ref, o_ref, *, K, C, H, W):
    """One grid step processes a (Bt, C, H*W) slab of the batch.

    w_ref : SMEM (2*K*K,) f32 -- conv weight flattened [c, kh, kw]; the 1/C of
            the channel mean is already folded into the c=0 (avg) taps.
    x_ref : VMEM (Bt, C, H*W) -- input features, spatial flattened onto lanes.
    o_ref : VMEM (Bt, H*W) f32 -- sigmoid(conv) spatial attention map.
    """
    P = K // 2
    HW = H * W
    Bt = x_ref.shape[0]

    x = x_ref[...].astype(jnp.float32)               # (Bt, C, HW)

    # Channel descriptors, lane-dense over H*W.  1/C is folded into the
    # weights, so the "mean" channel is a plain sum here.
    s = jnp.sum(x, axis=1)                           # (Bt, HW)
    mx = jnp.max(x, axis=1)                          # (Bt, HW)

    # Static lane coordinates for the zero-padding boundary masks.
    col = lax.broadcasted_iota(jnp.int32, (Bt, HW), 1)
    if (W & (W - 1)) == 0:                           # power-of-two fast path
        w_i = jnp.bitwise_and(col, W - 1)            # col % W
    else:
        w_i = col - (col // W) * W

    # Doubled maps: every shifted tap becomes a single static (wrap-around)
    # lane slice (an XLU rotation) -- no padded VMEM scratch round-trip.
    s2 = jnp.concatenate([s, s], axis=-1)            # (Bt, 2*HW)
    m2 = jnp.concatenate([mx, mx], axis=-1)

    def shift(x2, delta):
        # y[..., i] = map[..., (i + delta) % HW]
        off = delta % HW
        return x2[:, off:off + HW]

    zero = jnp.zeros((Bt, HW), jnp.float32)

    # Column taps: shift by dw along lanes and mask columns that would have
    # read from the zero padding.  2*K shifted maps, shared by all K rows.
    taps = []                                        # taps[c][kw], dw = kw - P
    for x2 in (s2, m2):
        per_dw = []
        for dw in range(-P, P + 1):
            ok_w = jnp.logical_and(w_i + dw >= 0, w_i + dw < W)
            per_dw.append(jnp.where(ok_w, shift(x2, dw), zero))
        taps.append(per_dw)

    # Row taps: for each dh accumulate the 2*K column taps with two
    # independent per-channel FMA chains (VALU ILP), then shift the partial
    # result by dh rows (dh*W lanes) and mask rows that fall in the padding.
    # valid_h(dh) at flat index r is simply 0 <= r + dh*W < H*W.
    acc = zero
    for dh in range(-P, P + 1):
        kh = dh + P
        u0 = w_ref[kh * K] * taps[0][0]              # avg channel chain
        u1 = w_ref[K * K + kh * K] * taps[1][0]      # max channel chain
        for kw in range(1, K):
            u0 = u0 + w_ref[kh * K + kw] * taps[0][kw]
            u1 = u1 + w_ref[K * K + kh * K + kw] * taps[1][kw]
        u = u0 + u1
        u2 = jnp.concatenate([u, u], axis=-1)
        ok_h = jnp.logical_and(col + dh * W >= 0, col + dh * W < HW)
        acc = acc + jnp.where(ok_h, shift(u2, dh * W), zero)

    o_ref[...] = jax.nn.sigmoid(acc).astype(o_ref.dtype)


def spatial_attention(x, weight, *, block_b=None):
    """x: (B, C, H, W) f32/bf16, weight: (1, 2, K, K) -> (B, 1, H, W) f32."""
    B, C, H, W = x.shape
    O, I, K, K2 = weight.shape
    assert O == 1 and I == 2 and K == K2 and K % 2 == 1, (
        "CBAM spatial conv expects weight (1, 2, K, K) with odd K")
    HW = H * W

    # Fold 1/C of the channel mean into the avg-channel taps at trace time.
    w_avg = (weight[0, 0].astype(jnp.float32) / C).reshape(-1)
    w_max = weight[0, 1].astype(jnp.float32).reshape(-1)
    w_flat = jnp.concatenate([w_avg, w_max])         # (2*K*K,)

    # Lane-dense view: spatial flattened onto lanes (free, contiguous reshape).
    x_flat = x.reshape(B, C, HW)

    # Fold several batch elements into one grid step to amortize per-step
    # overhead; the batch grid axis stays "parallel".
    if block_b is None:
        block_b = min(B, 8)
    grid = (pl.cdiv(B, block_b),)

    kernel = functools.partial(_spatial_attention_kernel, K=K, C=C, H=H, W=W)

    out_flat = pl.pallas_call(
        kernel,
        out_shape=jax.ShapeDtypeStruct((B, HW), jnp.float32),
        grid=grid,
        in_specs=[
            pl.BlockSpec(memory_space=pltpu.MemorySpace.SMEM),    # weights
            pl.BlockSpec((block_b, C, HW), lambda b: (b, 0, 0)),  # x slab
        ],
        out_specs=pl.BlockSpec((block_b, HW), lambda b: (b, 0)),  # lane-dense
        compiler_params=pltpu.CompilerParams(
            dimension_semantics=("parallel",)),
    )(w_flat, x_flat)

    return out_flat.reshape(B, 1, H, W)


def _reference(x, weight):
    avg = jnp.mean(x.astype(jnp.float32), axis=1, keepdims=True)
    mx = jnp.max(x.astype(jnp.float32), axis=1, keepdims=True)
    stacked = jnp.concatenate([avg, mx], axis=1)
    y = jax.lax.conv_general_dilated(
        stacked, weight.astype(jnp.float32), window_strides=(1, 1),
        padding="SAME", dimension_numbers=("NCHW", "OIHW", "NCHW"))
    return jax.nn.sigmoid(y)


if __name__ == "__main__":
    B, C, H, W, K = 2, 4, 16, 16, 7

    key = jax.random.PRNGKey(0)
    kx, kw = jax.random.split(key)
    x = jax.random.normal(kx, (B, C, H, W), dtype=jnp.float32)
    # nn.Conv2d(2, 1, 7, bias=False)-shaped deterministic weight.
    weight = 0.1 * jax.random.normal(kw, (1, 2, K, K), dtype=jnp.float32)

    out = spatial_attention(x, weight)
    out = jax.block_until_ready(out)

    ref = _reference(x, weight)
    assert out.shape == (B, 1, H, W), out.shape
    err = float(jnp.max(jnp.abs(out - ref)))
    assert jnp.allclose(out, ref, atol=1e-5, rtol=1e-5), (
        f"mismatch vs reference: max abs err = {err}")

    print("KERNEL_OK")
</pallas_src>

<mosaic_0001>
module attributes {stable_mosaic.version = 11 : i64} {
  func.func @_spatial_attention_kernel(%arg0: i32, %arg1: memref<98xf32, #tpu.memory_space<smem>>, %arg2: memref<2x4x256xf32, #tpu.memory_space<vmem>>, %arg3: memref<2x256xf32, #tpu.memory_space<vmem>>) attributes {dimension_semantics = [#tpu.dimension_semantics<parallel>], iteration_bounds = array<i64: 1>, scalar_prefetch = 0 : i64, scratch_operands = 0 : i64, tpu.core_type = #tpu.core_type<tc>, window_params = [{transform_indices = @transform_0, window_bounds = array<i64: 98>}, {transform_indices = @transform_1, window_bounds = array<i64: 2, 4, 256>}, {transform_indices = @transform_2, window_bounds = array<i64: 2, 256>}]} {
    %c0 = arith.constant 0 : index
    %c0_0 = arith.constant 0 : index
    %c0_1 = arith.constant 0 : index
    %0 = vector.load %arg2[%c0, %c0_0, %c0_1] : memref<2x4x256xf32, #tpu.memory_space<vmem>>, vector<2x4x256xf32>
    %cst = arith.constant dense<0.000000e+00> : vector<2x256xf32>
    %1 = vector.multi_reduction <add>, %0, %cst [1] : vector<2x4x256xf32> to vector<2x256xf32>
    %cst_2 = arith.constant dense<0xFF800000> : vector<2x256xf32>
    %2 = vector.multi_reduction <maximumf>, %0, %cst_2 [1] : vector<2x4x256xf32> to vector<2x256xf32>
    %3 = tpu.iota {dimensions = array<i32: 1>} : vector<2x256xi32>
    %c15_i32 = arith.constant 15 : i32
    %4 = vector.broadcast %c15_i32 : i32 to vector<2x256xi32>
    %5 = arith.andi %3, %4 : vector<2x256xi32>
    %6 = tpu.concatenate %1, %1 in 1 : vector<2x256xf32>, vector<2x256xf32> -> vector<2x512xf32>
    %7 = tpu.concatenate %2, %2 in 1 : vector<2x256xf32>, vector<2x256xf32> -> vector<2x512xf32>
    %cst_3 = arith.constant 0.000000e+00 : f32
    %8 = vector.broadcast %cst_3 : f32 to vector<2x256xf32>
    %c-3_i32 = arith.constant -3 : i32
    %9 = vector.broadcast %c-3_i32 : i32 to vector<2x256xi32>
    %10 = arith.addi %5, %9 : vector<2x256xi32>
    %c0_i32 = arith.constant 0 : i32
    %11 = vector.broadcast %c0_i32 : i32 to vector<2x256xi32>
    %12 = arith.cmpi sge, %10, %11 : vector<2x256xi32>
    %c-3_i32_4 = arith.constant -3 : i32
    %13 = vector.broadcast %c-3_i32_4 : i32 to vector<2x256xi32>
    %14 = arith.addi %5, %13 : vector<2x256xi32>
    %c16_i32 = arith.constant 16 : i32
    %15 = vector.broadcast %c16_i32 : i32 to vector<2x256xi32>
    %16 = arith.cmpi slt, %14, %15 : vector<2x256xi32>
    %17 = arith.andi %12, %16 : vector<2x256xi1>
    %18 = vector.extract_strided_slice %6 {offsets = [0, 253], sizes = [2, 256], strides = [1, 1]} : vector<2x512xf32> to vector<2x256xf32>
    %19 = arith.select %17, %18, %8 : vector<2x256xi1>, vector<2x256xf32>
    %c-2_i32 = arith.constant -2 : i32
    %20 = vector.broadcast %c-2_i32 : i32 to vector<2x256xi32>
    %21 = arith.addi %5, %20 : vector<2x256xi32>
    %c0_i32_5 = arith.constant 0 : i32
    %22 = vector.broadcast %c0_i32_5 : i32 to vector<2x256xi32>
    %23 = arith.cmpi sge, %21, %22 : vector<2x256xi32>
    %c-2_i32_6 = arith.constant -2 : i32
    %24 = vector.broadcast %c-2_i32_6 : i32 to vector<2x256xi32>
    %25 = arith.addi %5, %24 : vector<2x256xi32>
    %c16_i32_7 = arith.constant 16 : i32
    %26 = vector.broadcast %c16_i32_7 : i32 to vector<2x256xi32>
    %27 = arith.cmpi slt, %25, %26 : vector<2x256xi32>
    %28 = arith.andi %23, %27 : vector<2x256xi1>
    %29 = vector.extract_strided_slice %6 {offsets = [0, 254], sizes = [2, 256], strides = [1, 1]} : vector<2x512xf32> to vector<2x256xf32>
    %30 = arith.select %28, %29, %8 : vector<2x256xi1>, vector<2x256xf32>
    %c-1_i32 = arith.constant -1 : i32
    %31 = vector.broadcast %c-1_i32 : i32 to vector<2x256xi32>
    %32 = arith.addi %5, %31 : vector<2x256xi32>
    %c0_i32_8 = arith.constant 0 : i32
    %33 = vector.broadcast %c0_i32_8 : i32 to vector<2x256xi32>
    %34 = arith.cmpi sge, %32, %33 : vector<2x256xi32>
    %c-1_i32_9 = arith.constant -1 : i32
    %35 = vector.broadcast %c-1_i32_9 : i32 to vector<2x256xi32>
    %36 = arith.addi %5, %35 : vector<2x256xi32>
    %c16_i32_10 = arith.constant 16 : i32
    %37 = vector.broadcast %c16_i32_10 : i32 to vector<2x256xi32>
    %38 = arith.cmpi slt, %36, %37 : vector<2x256xi32>
    %39 = arith.andi %34, %38 : vector<2x256xi1>
    %40 = vector.extract_strided_slice %6 {offsets = [0, 255], sizes = [2, 256], strides = [1, 1]} : vector<2x512xf32> to vector<2x256xf32>
    %41 = arith.select %39, %40, %8 : vector<2x256xi1>, vector<2x256xf32>
    %c0_i32_11 = arith.constant 0 : i32
    %42 = vector.broadcast %c0_i32_11 : i32 to vector<2x256xi32>
    %43 = arith.addi %5, %42 : vector<2x256xi32>
    %c0_i32_12 = arith.constant 0 : i32
    %44 = vector.broadcast %c0_i32_12 : i32 to vector<2x256xi32>
    %45 = arith.cmpi sge, %43, %44 : vector<2x256xi32>
    %c0_i32_13 = arith.constant 0 : i32
    %46 = vector.broadcast %c0_i32_13 : i32 to vector<2x256xi32>
    %47 = arith.addi %5, %46 : vector<2x256xi32>
    %c16_i32_14 = arith.constant 16 : i32
    %48 = vector.broadcast %c16_i32_14 : i32 to vector<2x256xi32>
    %49 = arith.cmpi slt, %47, %48 : vector<2x256xi32>
    %50 = arith.andi %45, %49 : vector<2x256xi1>
    %51 = vector.extract_strided_slice %6 {offsets = [0, 0], sizes = [2, 256], strides = [1, 1]} : vector<2x512xf32> to vector<2x256xf32>
    %52 = arith.select %50, %51, %8 : vector<2x256xi1>, vector<2x256xf32>
    %c1_i32 = arith.constant 1 : i32
    %53 = vector.broadcast %c1_i32 : i32 to vector<2x256xi32>
    %54 = arith.addi %5, %53 : vector<2x256xi32>
    %c0_i32_15 = arith.constant 0 : i32
    %55 = vector.broadcast %c0_i32_15 : i32 to vector<2x256xi32>
    %56 = arith.cmpi sge, %54, %55 : vector<2x256xi32>
    %c1_i32_16 = arith.constant 1 : i32
    %57 = vector.broadcast %c1_i32_16 : i32 to vector<2x256xi32>
    %58 = arith.addi %5, %57 : vector<2x256xi32>
    %c16_i32_17 = arith.constant 16 : i32
    %59 = vector.broadcast %c16_i32_17 : i32 to vector<2x256xi32>
    %60 = arith.cmpi slt, %58, %59 : vector<2x256xi32>
    %61 = arith.andi %56, %60 : vector<2x256xi1>
    %62 = vector.extract_strided_slice %6 {offsets = [0, 1], sizes = [2, 256], strides = [1, 1]} : vector<2x512xf32> to vector<2x256xf32>
    %63 = arith.select %61, %62, %8 : vector<2x256xi1>, vector<2x256xf32>
    %c2_i32 = arith.constant 2 : i32
    %64 = vector.broadcast %c2_i32 : i32 to vector<2x256xi32>
    %65 = arith.addi %5, %64 : vector<2x256xi32>
    %c0_i32_18 = arith.constant 0 : i32
    %66 = vector.broadcast %c0_i32_18 : i32 to vector<2x256xi32>
    %67 = arith.cmpi sge, %65, %66 : vector<2x256xi32>
    %c2_i32_19 = arith.constant 2 : i32
    %68 = vector.broadcast %c2_i32_19 : i32 to vector<2x256xi32>
    %69 = arith.addi %5, %68 : vector<2x256xi32>
    %c16_i32_20 = arith.constant 16 : i32
    %70 = vector.broadcast %c16_i32_20 : i32 to vector<2x256xi32>
    %71 = arith.cmpi slt, %69, %70 : vector<2x256xi32>
    %72 = arith.andi %67, %71 : vector<2x256xi1>
    %73 = vector.extract_strided_slice %6 {offsets = [0, 2], sizes = [2, 256], strides = [1, 1]} : vector<2x512xf32> to vector<2x256xf32>
    %74 = arith.select %72, %73, %8 : vector<2x256xi1>, vector<2x256xf32>
    %c3_i32 = arith.constant 3 : i32
    %75 = vector.broadcast %c3_i32 : i32 to vector<2x256xi32>
    %76 = arith.addi %5, %75 : vector<2x256xi32>
    %c0_i32_21 = arith.constant 0 : i32
    %77 = vector.broadcast %c0_i32_21 : i32 to vector<2x256xi32>
    %78 = arith.cmpi sge, %76, %77 : vector<2x256xi32>
    %c3_i32_22 = arith.constant 3 : i32
    %79 = vector.broadcast %c3_i32_22 : i32 to vector<2x256xi32>
    %80 = arith.addi %5, %79 : vector<2x256xi32>
    %c16_i32_23 = arith.constant 16 : i32
    %81 = vector.broadcast %c16_i32_23 : i32 to vector<2x256xi32>
    %82 = arith.cmpi slt, %80, %81 : vector<2x256xi32>
    %83 = arith.andi %78, %82 : vector<2x256xi1>
    %84 = vector.extract_strided_slice %6 {offsets = [0, 3], sizes = [2, 256], strides = [1, 1]} : vector<2x512xf32> to vector<2x256xf32>
    %85 = arith.select %83, %84, %8 : vector<2x256xi1>, vector<2x256xf32>
    %c-3_i32_24 = arith.constant -3 : i32
    %86 = vector.broadcast %c-3_i32_24 : i32 to vector<2x256xi32>
    %87 = arith.addi %5, %86 : vector<2x256xi32>
    %c0_i32_25 = arith.constant 0 : i32
    %88 = vector.broadcast %c0_i32_25 : i32 to vector<2x256xi32>
    %89 = arith.cmpi sge, %87, %88 : vector<2x256xi32>
    %c-3_i32_26 = arith.constant -3 : i32
    %90 = vector.broadcast %c-3_i32_26 : i32 to vector<2x256xi32>
    %91 = arith.addi %5, %90 : vector<2x256xi32>
    %c16_i32_27 = arith.constant 16 : i32
    %92 = vector.broadcast %c16_i32_27 : i32 to vector<2x256xi32>
    %93 = arith.cmpi slt, %91, %92 : vector<2x256xi32>
    %94 = arith.andi %89, %93 : vector<2x256xi1>
    %95 = vector.extract_strided_slice %7 {offsets = [0, 253], sizes = [2, 256], strides = [1, 1]} : vector<2x512xf32> to vector<2x256xf32>
    %96 = arith.select %94, %95, %8 : vector<2x256xi1>, vector<2x256xf32>
    %c-2_i32_28 = arith.constant -2 : i32
    %97 = vector.broadcast %c-2_i32_28 : i32 to vector<2x256xi32>
    %98 = arith.addi %5, %97 : vector<2x256xi32>
    %c0_i32_29 = arith.constant 0 : i32
    %99 = vector.broadcast %c0_i32_29 : i32 to vector<2x256xi32>
    %100 = arith.cmpi sge, %98, %99 : vector<2x256xi32>
    %c-2_i32_30 = arith.constant -2 : i32
    %101 = vector.broadcast %c-2_i32_30 : i32 to vector<2x256xi32>
    %102 = arith.addi %5, %101 : vector<2x256xi32>
    %c16_i32_31 = arith.constant 16 : i32
    %103 = vector.broadcast %c16_i32_31 : i32 to vector<2x256xi32>
    %104 = arith.cmpi slt, %102, %103 : vector<2x256xi32>
    %105 = arith.andi %100, %104 : vector<2x256xi1>
    %106 = vector.extract_strided_slice %7 {offsets = [0, 254], sizes = [2, 256], strides = [1, 1]} : vector<2x512xf32> to vector<2x256xf32>
    %107 = arith.select %105, %106, %8 : vector<2x256xi1>, vector<2x256xf32>
    %c-1_i32_32 = arith.constant -1 : i32
    %108 = vector.broadcast %c-1_i32_32 : i32 to vector<2x256xi32>
    %109 = arith.addi %5, %108 : vector<2x256xi32>
    %c0_i32_33 = arith.constant 0 : i32
    %110 = vector.broadcast %c0_i32_33 : i32 to vector<2x256xi32>
    %111 = arith.cmpi sge, %109, %110 : vector<2x256xi32>
    %c-1_i32_34 = arith.constant -1 : i32
    %112 = vector.broadcast %c-1_i32_34 : i32 to vector<2x256xi32>
    %113 = arith.addi %5, %112 : vector<2x256xi32>
    %c16_i32_35 = arith.constant 16 : i32
    %114 = vector.broadcast %c16_i32_35 : i32 to vector<2x256xi32>
    %115 = arith.cmpi slt, %113, %114 : vector<2x256xi32>
    %116 = arith.andi %111, %115 : vector<2x256xi1>
    %117 = vector.extract_strided_slice %7 {offsets = [0, 255], sizes = [2, 256], strides = [1, 1]} : vector<2x512xf32> to vector<2x256xf32>
    %118 = arith.select %116, %117, %8 : vector<2x256xi1>, vector<2x256xf32>
    %c0_i32_36 = arith.constant 0 : i32
    %119 = vector.broadcast %c0_i32_36 : i32 to vector<2x256xi32>
    %120 = arith.addi %5, %119 : vector<2x256xi32>
    %c0_i32_37 = arith.constant 0 : i32
    %121 = vector.broadcast %c0_i32_37 : i32 to vector<2x256xi32>
    %122 = arith.cmpi sge, %120, %121 : vector<2x256xi32>
    %c0_i32_38 = arith.constant 0 : i32
    %123 = vector.broadcast %c0_i32_38 : i32 to vector<2x256xi32>
    %124 = arith.addi %5, %123 : vector<2x256xi32>
    %c16_i32_39 = arith.constant 16 : i32
    %125 = vector.broadcast %c16_i32_39 : i32 to vector<2x256xi32>
    %126 = arith.cmpi slt, %124, %125 : vector<2x256xi32>
    %127 = arith.andi %122, %126 : vector<2x256xi1>
    %128 = vector.extract_strided_slice %7 {offsets = [0, 0], sizes = [2, 256], strides = [1, 1]} : vector<2x512xf32> to vector<2x256xf32>
    %129 = arith.select %127, %128, %8 : vector<2x256xi1>, vector<2x256xf32>
    %c1_i32_40 = arith.constant 1 : i32
    %130 = vector.broadcast %c1_i32_40 : i32 to vector<2x256xi32>
    %131 = arith.addi %5, %130 : vector<2x256xi32>
    %c0_i32_41 = arith.constant 0 : i32
    %132 = vector.broadcast %c0_i32_41 : i32 to vector<2x256xi32>
    %133 = arith.cmpi sge, %131, %132 : vector<2x256xi32>
    %c1_i32_42 = arith.constant 1 : i32
    %134 = vector.broadcast %c1_i32_42 : i32 to vector<2x256xi32>
    %135 = arith.addi %5, %134 : vector<2x256xi32>
    %c16_i32_43 = arith.constant 16 : i32
    %136 = vector.broadcast %c16_i32_43 : i32 to vector<2x256xi32>
    %137 = arith.cmpi slt, %135, %136 : vector<2x256xi32>
    %138 = arith.andi %133, %137 : vector<2x256xi1>
    %139 = vector.extract_strided_slice %7 {offsets = [0, 1], sizes = [2, 256], strides = [1, 1]} : vector<2x512xf32> to vector<2x256xf32>
    %140 = arith.select %138, %139, %8 : vector<2x256xi1>, vector<2x256xf32>
    %c2_i32_44 = arith.constant 2 : i32
    %141 = vector.broadcast %c2_i32_44 : i32 to vector<2x256xi32>
    %142 = arith.addi %5, %141 : vector<2x256xi32>
    %c0_i32_45 = arith.constant 0 : i32
    %143 = vector.broadcast %c0_i32_45 : i32 to vector<2x256xi32>
    %144 = arith.cmpi sge, %142, %143 : vector<2x256xi32>
    %c2_i32_46 = arith.constant 2 : i32
    %145 = vector.broadcast %c2_i32_46 : i32 to vector<2x256xi32>
    %146 = arith.addi %5, %145 : vector<2x256xi32>
    %c16_i32_47 = arith.constant 16 : i32
    %147 = vector.broadcast %c16_i32_47 : i32 to vector<2x256xi32>
    %148 = arith.cmpi slt, %146, %147 : vector<2x256xi32>
    %149 = arith.andi %144, %148 : vector<2x256xi1>
    %150 = vector.extract_strided_slice %7 {offsets = [0, 2], sizes = [2, 256], strides = [1, 1]} : vector<2x512xf32> to vector<2x256xf32>
    %151 = arith.select %149, %150, %8 : vector<2x256xi1>, vector<2x256xf32>
    %c3_i32_48 = arith.constant 3 : i32
    %152 = vector.broadcast %c3_i32_48 : i32 to vector<2x256xi32>
    %153 = arith.addi %5, %152 : vector<2x256xi32>
    %c0_i32_49 = arith.constant 0 : i32
    %154 = vector.broadcast %c0_i32_49 : i32 to vector<2x256xi32>
    %155 = arith.cmpi sge, %153, %154 : vector<2x256xi32>
    %c3_i32_50 = arith.constant 3 : i32
    %156 = vector.broadcast %c3_i32_50 : i32 to vector<2x256xi32>
    %157 = arith.addi %5, %156 : vector<2x256xi32>
    %c16_i32_51 = arith.constant 16 : i32
    %158 = vector.broadcast %c16_i32_51 : i32 to vector<2x256xi32>
    %159 = arith.cmpi slt, %157, %158 : vector<2x256xi32>
    %160 = arith.andi %155, %159 : vector<2x256xi1>
    %161 = vector.extract_strided_slice %7 {offsets = [0, 3], sizes = [2, 256], strides = [1, 1]} : vector<2x512xf32> to vector<2x256xf32>
    %162 = arith.select %160, %161, %8 : vector<2x256xi1>, vector<2x256xf32>
    %c0_52 = arith.constant 0 : index
    %163 = memref.load %arg1[%c0_52] : memref<98xf32, #tpu.memory_space<smem>>
    %164 = vector.broadcast %163 : f32 to vector<2x256xf32>
    %165 = arith.mulf %164, %19 : vector<2x256xf32>
    %c49 = arith.constant 49 : index
    %166 = memref.load %arg1[%c49] : memref<98xf32, #tpu.memory_space<smem>>
    %167 = vector.broadcast %166 : f32 to vector<2x256xf32>
    %168 = arith.mulf %167, %96 : vector<2x256xf32>
    %c1 = arith.constant 1 : index
    %169 = memref.load %arg1[%c1] : memref<98xf32, #tpu.memory_space<smem>>
    %170 = vector.broadcast %169 : f32 to vector<2x256xf32>
    %171 = arith.mulf %170, %30 : vector<2x256xf32>
    %172 = arith.addf %165, %171 : vector<2x256xf32>
    %c50 = arith.constant 50 : index
    %173 = memref.load %arg1[%c50] : memref<98xf32, #tpu.memory_space<smem>>
    %174 = vector.broadcast %173 : f32 to vector<2x256xf32>
    %175 = arith.mulf %174, %107 : vector<2x256xf32>
    %176 = arith.addf %168, %175 : vector<2x256xf32>
    %c2 = arith.constant 2 : index
    %177 = memref.load %arg1[%c2] : memref<98xf32, #tpu.memory_space<smem>>
    %178 = vector.broadcast %177 : f32 to vector<2x256xf32>
    %179 = arith.mulf %178, %41 : vector<2x256xf32>
    %180 = arith.addf %172, %179 : vector<2x256xf32>
    %c51 = arith.constant 51 : index
    %181 = memref.load %arg1[%c51] : memref<98xf32, #tpu.memory_space<smem>>
    %182 = vector.broadcast %181 : f32 to vector<2x256xf32>
    %183 = arith.mulf %182, %118 : vector<2x256xf32>
    %184 = arith.addf %176, %183 : vector<2x256xf32>
    %c3 = arith.constant 3 : index
    %185 = memref.load %arg1[%c3] : memref<98xf32, #tpu.memory_space<smem>>
    %186 = vector.broadcast %185 : f32 to vector<2x256xf32>
    %187 = arith.mulf %186, %52 : vector<2x256xf32>
    %188 = arith.addf %180, %187 : vector<2x256xf32>
    %c52 = arith.constant 52 : index
    %189 = memref.load %arg1[%c52] : memref<98xf32, #tpu.memory_space<smem>>
    %190 = vector.broadcast %189 : f32 to vector<2x256xf32>
    %191 = arith.mulf %190, %129 : vector<2x256xf32>
    %192 = arith.addf %184, %191 : vector<2x256xf32>
    %c4 = arith.constant 4 : index
    %193 = memref.load %arg1[%c4] : memref<98xf32, #tpu.memory_space<smem>>
    %194 = vector.broadcast %193 : f32 to vector<2x256xf32>
    %195 = arith.mulf %194, %63 : vector<2x256xf32>
    %196 = arith.addf %188, %195 : vector<2x256xf32>
    %c53 = arith.constant 53 : index
    %197 = memref.load %arg1[%c53] : memref<98xf32, #tpu.memory_space<smem>>
    %198 = vector.broadcast %197 : f32 to vector<2x256xf32>
    %199 = arith.mulf %198, %140 : vector<2x256xf32>
    %200 = arith.addf %192, %199 : vector<2x256xf32>
    %c5 = arith.constant 5 : index
    %201 = memref.load %arg1[%c5] : memref<98xf32, #tpu.memory_space<smem>>
    %202 = vector.broadcast %201 : f32 to vector<2x256xf32>
    %203 = arith.mulf %202, %74 : vector<2x256xf32>
    %204 = arith.addf %196, %203 : vector<2x256xf32>
    %c54 = arith.constant 54 : index
    %205 = memref.load %arg1[%c54] : memref<98xf32, #tpu.memory_space<smem>>
    %206 = vector.broadcast %205 : f32 to vector<2x256xf32>
    %207 = arith.mulf %206, %151 : vector<2x256xf32>
    %208 = arith.addf %200, %207 : vector<2x256xf32>
    %c6 = arith.constant 6 : index
    %209 = memref.load %arg1[%c6] : memref<98xf32, #tpu.memory_space<smem>>
    %210 = vector.broadcast %209 : f32 to vector<2x256xf32>
    %211 = arith.mulf %210, %85 : vector<2x256xf32>
    %212 = arith.addf %204, %211 : vector<2x256xf32>
    %c55 = arith.constant 55 : index
    %213 = memref.load %arg1[%c55] : memref<98xf32, #tpu.memory_space<smem>>
    %214 = vector.broadcast %213 : f32 to vector<2x256xf32>
    %215 = arith.mulf %214, %162 : vector<2x256xf32>
    %216 = arith.addf %208, %215 : vector<2x256xf32>
    %217 = arith.addf %212, %216 : vector<2x256xf32>
    %218 = tpu.concatenate %217, %217 in 1 : vector<2x256xf32>, vector<2x256xf32> -> vector<2x512xf32>
    %c-48_i32 = arith.constant -48 : i32
    %219 = vector.broadcast %c-48_i32 : i32 to vector<2x256xi32>
    %220 = arith.addi %3, %219 : vector<2x256xi32>
    %c0_i32_53 = arith.constant 0 : i32
    %221 = vector.broadcast %c0_i32_53 : i32 to vector<2x256xi32>
    %222 = arith.cmpi sge, %220, %221 : vector<2x256xi32>
    %c-48_i32_54 = arith.constant -48 : i32
    %223 = vector.broadcast %c-48_i32_54 : i32 to vector<2x256xi32>
    %224 = arith.addi %3, %223 : vector<2x256xi32>
    %c256_i32 = arith.constant 256 : i32
    %225 = vector.broadcast %c256_i32 : i32 to vector<2x256xi32>
    %226 = arith.cmpi slt, %224, %225 : vector<2x256xi32>
    %227 = arith.andi %222, %226 : vector<2x256xi1>
    %228 = vector.extract_strided_slice %218 {offsets = [0, 208], sizes = [2, 256], strides = [1, 1]} : vector<2x512xf32> to vector<2x256xf32>
    %229 = arith.select %227, %228, %8 : vector<2x256xi1>, vector<2x256xf32>
    %230 = arith.addf %8, %229 : vector<2x256xf32>
    %c7 = arith.constant 7 : index
    %231 = memref.load %arg1[%c7] : memref<98xf32, #tpu.memory_space<smem>>
    %232 = vector.broadcast %231 : f32 to vector<2x256xf32>
    %233 = arith.mulf %232, %19 : vector<2x256xf32>
    %c56 = arith.constant 56 : index
    %234 = memref.load %arg1[%c56] : memref<98xf32, #tpu.memory_space<smem>>
    %235 = vector.broadcast %234 : f32 to vector<2x256xf32>
    %236 = arith.mulf %235, %96 : vector<2x256xf32>
    %c8 = arith.constant 8 : index
    %237 = memref.load %arg1[%c8] : memref<98xf32, #tpu.memory_space<smem>>
    %238 = vector.broadcast %237 : f32 to vector<2x256xf32>
    %239 = arith.mulf %238, %30 : vector<2x256xf32>
    %240 = arith.addf %233, %239 : vector<2x256xf32>
    %c57 = arith.constant 57 : index
    %241 = memref.load %arg1[%c57] : memref<98xf32, #tpu.memory_space<smem>>
    %242 = vector.broadcast %241 : f32 to vector<2x256xf32>
    %243 = arith.mulf %242, %107 : vector<2x256xf32>
    %244 = arith.addf %236, %243 : vector<2x256xf32>
    %c9 = arith.constant 9 : index
    %245 = memref.load %arg1[%c9] : memref<98xf32, #tpu.memory_space<smem>>
    %246 = vector.broadcast %245 : f32 to vector<2x256xf32>
    %247 = arith.mulf %246, %41 : vector<2x256xf32>
    %248 = arith.addf %240, %247 : vector<2x256xf32>
    %c58 = arith.constant 58 : index
    %249 = memref.load %arg1[%c58] : memref<98xf32, #tpu.memory_space<smem>>
    %250 = vector.broadcast %249 : f32 to vector<2x256xf32>
    %251 = arith.mulf %250, %118 : vector<2x256xf32>
    %252 = arith.addf %244, %251 : vector<2x256xf32>
    %c10 = arith.constant 10 : index
    %253 = memref.load %arg1[%c10] : memref<98xf32, #tpu.memory_space<smem>>
    %254 = vector.broadcast %253 : f32 to vector<2x256xf32>
    %255 = arith.mulf %254, %52 : vector<2x256xf32>
    %256 = arith.addf %248, %255 : vector<2x256xf32>
    %c59 = arith.constant 59 : index
    %257 = memref.load %arg1[%c59] : memref<98xf32, #tpu.memory_space<smem>>
    %258 = vector.broadcast %257 : f32 to vector<2x256xf32>
    %259 = arith.mulf %258, %129 : vector<2x256xf32>
    %260 = arith.addf %252, %259 : vector<2x256xf32>
    %c11 = arith.constant 11 : index
    %261 = memref.load %arg1[%c11] : memref<98xf32, #tpu.memory_space<smem>>
    %262 = vector.broadcast %261 : f32 to vector<2x256xf32>
    %263 = arith.mulf %262, %63 : vector<2x256xf32>
    %264 = arith.addf %256, %263 : vector<2x256xf32>
    %c60 = arith.constant 60 : index
    %265 = memref.load %arg1[%c60] : memref<98xf32, #tpu.memory_space<smem>>
    %266 = vector.broadcast %265 : f32 to vector<2x256xf32>
    %267 = arith.mulf %266, %140 : vector<2x256xf32>
    %268 = arith.addf %260, %267 : vector<2x256xf32>
    %c12 = arith.constant 12 : index
    %269 = memref.load %arg1[%c12] : memref<98xf32, #tpu.memory_space<smem>>
    %270 = vector.broadcast %269 : f32 to vector<2x256xf32>
    %271 = arith.mulf %270, %74 : vector<2x256xf32>
    %272 = arith.addf %264, %271 : vector<2x256xf32>
    %c61 = arith.constant 61 : index
    %273 = memref.load %arg1[%c61] : memref<98xf32, #tpu.memory_space<smem>>
    %274 = vector.broadcast %273 : f32 to vector<2x256xf32>
    %275 = arith.mulf %274, %151 : vector<2x256xf32>
    %276 = arith.addf %268, %275 : vector<2x256xf32>
    %c13 = arith.constant 13 : index
    %277 = memref.load %arg1[%c13] : memref<98xf32, #tpu.memory_space<smem>>
    %278 = vector.broadcast %277 : f32 to vector<2x256xf32>
    %279 = arith.mulf %278, %85 : vector<2x256xf32>
    %280 = arith.addf %272, %279 : vector<2x256xf32>
    %c62 = arith.constant 62 : index
    %281 = memref.load %arg1[%c62] : memref<98xf32, #tpu.memory_space<smem>>
    %282 = vector.broadcast %281 : f32 to vector<2x256xf32>
    %283 = arith.mulf %282, %162 : vector<2x256xf32>
    %284 = arith.addf %276, %283 : vector<2x256xf32>
    %285 = arith.addf %280, %284 : vector<2x256xf32>
    %286 = tpu.concatenate %285, %285 in 1 : vector<2x256xf32>, vector<2x256xf32> -> vector<2x512xf32>
    %c-32_i32 = arith.constant -32 : i32
    %287 = vector.broadcast %c-32_i32 : i32 to vector<2x256xi32>
    %288 = arith.addi %3, %287 : vector<2x256xi32>
    %c0_i32_55 = arith.constant 0 : i32
    %289 = vector.broadcast %c0_i32_55 : i32 to vector<2x256xi32>
    %290 = arith.cmpi sge, %288, %289 : vector<2x256xi32>
    %c-32_i32_56 = arith.constant -32 : i32
    %291 = vector.broadcast %c-32_i32_56 : i32 to vector<2x256xi32>
    %292 = arith.addi %3, %291 : vector<2x256xi32>
    %c256_i32_57 = arith.constant 256 : i32
    %293 = vector.broadcast %c256_i32_57 : i32 to vector<2x256xi32>
    %294 = arith.cmpi slt, %292, %293 : vector<2x256xi32>
    %295 = arith.andi %290, %294 : vector<2x256xi1>
    %296 = vector.extract_strided_slice %286 {offsets = [0, 224], sizes = [2, 256], strides = [1, 1]} : vector<2x512xf32> to vector<2x256xf32>
    %297 = arith.select %295, %296, %8 : vector<2x256xi1>, vector<2x256xf32>
    %298 = arith.addf %230, %297 : vector<2x256xf32>
    %c14 = arith.constant 14 : index
    %299 = memref.load %arg1[%c14] : memref<98xf32, #tpu.memory_space<smem>>
    %300 = vector.broadcast %299 : f32 to vector<2x256xf32>
    %301 = arith.mulf %300, %19 : vector<2x256xf32>
    %c63 = arith.constant 63 : index
    %302 = memref.load %arg1[%c63] : memref<98xf32, #tpu.memory_space<smem>>
    %303 = vector.broadcast %302 : f32 to vector<2x256xf32>
    %304 = arith.mulf %303, %96 : vector<2x256xf32>
    %c15 = arith.constant 15 : index
    %305 = memref.load %arg1[%c15] : memref<98xf32, #tpu.memory_space<smem>>
    %306 = vector.broadcast %305 : f32 to vector<2x256xf32>
    %307 = arith.mulf %306, %30 : vector<2x256xf32>
    %308 = arith.addf %301, %307 : vector<2x256xf32>
    %c64 = arith.constant 64 : index
    %309 = memref.load %arg1[%c64] : memref<98xf32, #tpu.memory_space<smem>>
    %310 = vector.broadcast %309 : f32 to vector<2x256xf32>
    %311 = arith.mulf %310, %107 : vector<2x256xf32>
    %312 = arith.addf %304, %311 : vector<2x256xf32>
    %c16 = arith.constant 16 : index
    %313 = memref.load %arg1[%c16] : memref<98xf32, #tpu.memory_space<smem>>
    %314 = vector.broadcast %313 : f32 to vector<2x256xf32>
    %315 = arith.mulf %314, %41 : vector<2x256xf32>
    %316 = arith.addf %308, %315 : vector<2x256xf32>
    %c65 = arith.constant 65 : index
    %317 = memref.load %arg1[%c65] : memref<98xf32, #tpu.memory_space<smem>>
    %318 = vector.broadcast %317 : f32 to vector<2x256xf32>
    %319 = arith.mulf %318, %118 : vector<2x256xf32>
    %320 = arith.addf %312, %319 : vector<2x256xf32>
    %c17 = arith.constant 17 : index
    %321 = memref.load %arg1[%c17] : memref<98xf32, #tpu.memory_space<smem>>
    %322 = vector.broadcast %321 : f32 to vector<2x256xf32>
    %323 = arith.mulf %322, %52 : vector<2x256xf32>
    %324 = arith.addf %316, %323 : vector<2x256xf32>
    %c66 = arith.constant 66 : index
    %325 = memref.load %arg1[%c66] : memref<98xf32, #tpu.memory_space<smem>>
    %326 = vector.broadcast %325 : f32 to vector<2x256xf32>
    %327 = arith.mulf %326, %129 : vector<2x256xf32>
    %328 = arith.addf %320, %327 : vector<2x256xf32>
    %c18 = arith.constant 18 : index
    %329 = memref.load %arg1[%c18] : memref<98xf32, #tpu.memory_space<smem>>
    %330 = vector.broadcast %329 : f32 to vector<2x256xf32>
    %331 = arith.mulf %330, %63 : vector<2x256xf32>
    %332 = arith.addf %324, %331 : vector<2x256xf32>
    %c67 = arith.constant 67 : index
    %333 = memref.load %arg1[%c67] : memref<98xf32, #tpu.memory_space<smem>>
    %334 = vector.broadcast %333 : f32 to vector<2x256xf32>
    %335 = arith.mulf %334, %140 : vector<2x256xf32>
    %336 = arith.addf %328, %335 : vector<2x256xf32>
    %c19 = arith.constant 19 : index
    %337 = memref.load %arg1[%c19] : memref<98xf32, #tpu.memory_space<smem>>
    %338 = vector.broadcast %337 : f32 to vector<2x256xf32>
    %339 = arith.mulf %338, %74 : vector<2x256xf32>
    %340 = arith.addf %332, %339 : vector<2x256xf32>
    %c68 = arith.constant 68 : index
    %341 = memref.load %arg1[%c68] : memref<98xf32, #tpu.memory_space<smem>>
    %342 = vector.broadcast %341 : f32 to vector<2x256xf32>
    %343 = arith.mulf %342, %151 : vector<2x256xf32>
    %344 = arith.addf %336, %343 : vector<2x256xf32>
    %c20 = arith.constant 20 : index
    %345 = memref.load %arg1[%c20] : memref<98xf32, #tpu.memory_space<smem>>
    %346 = vector.broadcast %345 : f32 to vector<2x256xf32>
    %347 = arith.mulf %346, %85 : vector<2x256xf32>
    %348 = arith.addf %340, %347 : vector<2x256xf32>
    %c69 = arith.constant 69 : index
    %349 = memref.load %arg1[%c69] : memref<98xf32, #tpu.memory_space<smem>>
    %350 = vector.broadcast %349 : f32 to vector<2x256xf32>
    %351 = arith.mulf %350, %162 : vector<2x256xf32>
    %352 = arith.addf %344, %351 : vector<2x256xf32>
    %353 = arith.addf %348, %352 : vector<2x256xf32>
    %354 = tpu.concatenate %353, %353 in 1 : vector<2x256xf32>, vector<2x256xf32> -> vector<2x512xf32>
    %c-16_i32 = arith.constant -16 : i32
    %355 = vector.broadcast %c-16_i32 : i32 to vector<2x256xi32>
    %356 = arith.addi %3, %355 : vector<2x256xi32>
    %c0_i32_58 = arith.constant 0 : i32
    %357 = vector.broadcast %c0_i32_58 : i32 to vector<2x256xi32>
    %358 = arith.cmpi sge, %356, %357 : vector<2x256xi32>
    %c-16_i32_59 = arith.constant -16 : i32
    %359 = vector.broadcast %c-16_i32_59 : i32 to vector<2x256xi32>
    %360 = arith.addi %3, %359 : vector<2x256xi32>
    %c256_i32_60 = arith.constant 256 : i32
    %361 = vector.broadcast %c256_i32_60 : i32 to vector<2x256xi32>
    %362 = arith.cmpi slt, %360, %361 : vector<2x256xi32>
    %363 = arith.andi %358, %362 : vector<2x256xi1>
    %364 = vector.extract_strided_slice %354 {offsets = [0, 240], sizes = [2, 256], strides = [1, 1]} : vector<2x512xf32> to vector<2x256xf32>
    %365 = arith.select %363, %364, %8 : vector<2x256xi1>, vector<2x256xf32>
    %366 = arith.addf %298, %365 : vector<2x256xf32>
    %c21 = arith.constant 21 : index
    %367 = memref.load %arg1[%c21] : memref<98xf32, #tpu.memory_space<smem>>
    %368 = vector.broadcast %367 : f32 to vector<2x256xf32>
    %369 = arith.mulf %368, %19 : vector<2x256xf32>
    %c70 = arith.constant 70 : index
    %370 = memref.load %arg1[%c70] : memref<98xf32, #tpu.memory_space<smem>>
    %371 = vector.broadcast %370 : f32 to vector<2x256xf32>
    %372 = arith.mulf %371, %96 : vector<2x256xf32>
    %c22 = arith.constant 22 : index
    %373 = memref.load %arg1[%c22] : memref<98xf32, #tpu.memory_space<smem>>
    %374 = vector.broadcast %373 : f32 to vector<2x256xf32>
    %375 = arith.mulf %374, %30 : vector<2x256xf32>
    %376 = arith.addf %369, %375 : vector<2x256xf32>
    %c71 = arith.constant 71 : index
    %377 = memref.load %arg1[%c71] : memref<98xf32, #tpu.memory_space<smem>>
    %378 = vector.broadcast %377 : f32 to vector<2x256xf32>
    %379 = arith.mulf %378, %107 : vector<2x256xf32>
    %380 = arith.addf %372, %379 : vector<2x256xf32>
    %c23 = arith.constant 23 : index
    %381 = memref.load %arg1[%c23] : memref<98xf32, #tpu.memory_space<smem>>
    %382 = vector.broadcast %381 : f32 to vector<2x256xf32>
    %383 = arith.mulf %382, %41 : vector<2x256xf32>
    %384 = arith.addf %376, %383 : vector<2x256xf32>
    %c72 = arith.constant 72 : index
    %385 = memref.load %arg1[%c72] : memref<98xf32, #tpu.memory_space<smem>>
    %386 = vector.broadcast %385 : f32 to vector<2x256xf32>
    %387 = arith.mulf %386, %118 : vector<2x256xf32>
    %388 = arith.addf %380, %387 : vector<2x256xf32>
    %c24 = arith.constant 24 : index
    %389 = memref.load %arg1[%c24] : memref<98xf32, #tpu.memory_space<smem>>
    %390 = vector.broadcast %389 : f32 to vector<2x256xf32>
    %391 = arith.mulf %390, %52 : vector<2x256xf32>
    %392 = arith.addf %384, %391 : vector<2x256xf32>
    %c73 = arith.constant 73 : index
    %393 = memref.load %arg1[%c73] : memref<98xf32, #tpu.memory_space<smem>>
    %394 = vector.broadcast %393 : f32 to vector<2x256xf32>
    %395 = arith.mulf %394, %129 : vector<2x256xf32>
    %396 = arith.addf %388, %395 : vector<2x256xf32>
    %c25 = arith.constant 25 : index
    %397 = memref.load %arg1[%c25] : memref<98xf32, #tpu.memory_space<smem>>
    %398 = vector.broadcast %397 : f32 to vector<2x256xf32>
    %399 = arith.mulf %398, %63 : vector<2x256xf32>
    %400 = arith.addf %392, %399 : vector<2x256xf32>
    %c74 = arith.constant 74 : index
    %401 = memref.load %arg1[%c74] : memref<98xf32, #tpu.memory_space<smem>>
    %402 = vector.broadcast %401 : f32 to vector<2x256xf32>
    %403 = arith.mulf %402, %140 : vector<2x256xf32>
    %404 = arith.addf %396, %403 : vector<2x256xf32>
    %c26 = arith.constant 26 : index
    %405 = memref.load %arg1[%c26] : memref<98xf32, #tpu.memory_space<smem>>
    %406 = vector.broadcast %405 : f32 to vector<2x256xf32>
    %407 = arith.mulf %406, %74 : vector<2x256xf32>
    %408 = arith.addf %400, %407 : vector<2x256xf32>
    %c75 = arith.constant 75 : index
    %409 = memref.load %arg1[%c75] : memref<98xf32, #tpu.memory_space<smem>>
    %410 = vector.broadcast %409 : f32 to vector<2x256xf32>
    %411 = arith.mulf %410, %151 : vector<2x256xf32>
    %412 = arith.addf %404, %411 : vector<2x256xf32>
    %c27 = arith.constant 27 : index
    %413 = memref.load %arg1[%c27] : memref<98xf32, #tpu.memory_space<smem>>
    %414 = vector.broadcast %413 : f32 to vector<2x256xf32>
    %415 = arith.mulf %414, %85 : vector<2x256xf32>
    %416 = arith.addf %408, %415 : vector<2x256xf32>
    %c76 = arith.constant 76 : index
    %417 = memref.load %arg1[%c76] : memref<98xf32, #tpu.memory_space<smem>>
    %418 = vector.broadcast %417 : f32 to vector<2x256xf32>
    %419 = arith.mulf %418, %162 : vector<2x256xf32>
    %420 = arith.addf %412, %419 : vector<2x256xf32>
    %421 = arith.addf %416, %420 : vector<2x256xf32>
    %422 = tpu.concatenate %421, %421 in 1 : vector<2x256xf32>, vector<2x256xf32> -> vector<2x512xf32>
    %c0_i32_61 = arith.constant 0 : i32
    %423 = vector.broadcast %c0_i32_61 : i32 to vector<2x256xi32>
    %424 = arith.addi %3, %423 : vector<2x256xi32>
    %c0_i32_62 = arith.constant 0 : i32
    %425 = vector.broadcast %c0_i32_62 : i32 to vector<2x256xi32>
    %426 = arith.cmpi sge, %424, %425 : vector<2x256xi32>
    %c0_i32_63 = arith.constant 0 : i32
    %427 = vector.broadcast %c0_i32_63 : i32 to vector<2x256xi32>
    %428 = arith.addi %3, %427 : vector<2x256xi32>
    %c256_i32_64 = arith.constant 256 : i32
    %429 = vector.broadcast %c256_i32_64 : i32 to vector<2x256xi32>
    %430 = arith.cmpi slt, %428, %429 : vector<2x256xi32>
    %431 = arith.andi %426, %430 : vector<2x256xi1>
    %432 = vector.extract_strided_slice %422 {offsets = [0, 0], sizes = [2, 256], strides = [1, 1]} : vector<2x512xf32> to vector<2x256xf32>
    %433 = arith.select %431, %432, %8 : vector<2x256xi1>, vector<2x256xf32>
    %434 = arith.addf %366, %433 : vector<2x256xf32>
    %c28 = arith.constant 28 : index
    %435 = memref.load %arg1[%c28] : memref<98xf32, #tpu.memory_space<smem>>
    %436 = vector.broadcast %435 : f32 to vector<2x256xf32>
    %437 = arith.mulf %436, %19 : vector<2x256xf32>
    %c77 = arith.constant 77 : index
    %438 = memref.load %arg1[%c77] : memref<98xf32, #tpu.memory_space<smem>>
    %439 = vector.broadcast %438 : f32 to vector<2x256xf32>
    %440 = arith.mulf %439, %96 : vector<2x256xf32>
    %c29 = arith.constant 29 : index
    %441 = memref.load %arg1[%c29] : memref<98xf32, #tpu.memory_space<smem>>
    %442 = vector.broadcast %441 : f32 to vector<2x256xf32>
    %443 = arith.mulf %442, %30 : vector<2x256xf32>
    %444 = arith.addf %437, %443 : vector<2x256xf32>
    %c78 = arith.constant 78 : index
    %445 = memref.load %arg1[%c78] : memref<98xf32, #tpu.memory_space<smem>>
    %446 = vector.broadcast %445 : f32 to vector<2x256xf32>
    %447 = arith.mulf %446, %107 : vector<2x256xf32>
    %448 = arith.addf %440, %447 : vector<2x256xf32>
    %c30 = arith.constant 30 : index
    %449 = memref.load %arg1[%c30] : memref<98xf32, #tpu.memory_space<smem>>
    %450 = vector.broadcast %449 : f32 to vector<2x256xf32>
    %451 = arith.mulf %450, %41 : vector<2x256xf32>
    %452 = arith.addf %444, %451 : vector<2x256xf32>
    %c79 = arith.constant 79 : index
    %453 = memref.load %arg1[%c79] : memref<98xf32, #tpu.memory_space<smem>>
    %454 = vector.broadcast %453 : f32 to vector<2x256xf32>
    %455 = arith.mulf %454, %118 : vector<2x256xf32>
    %456 = arith.addf %448, %455 : vector<2x256xf32>
    %c31 = arith.constant 31 : index
    %457 = memref.load %arg1[%c31] : memref<98xf32, #tpu.memory_space<smem>>
    %458 = vector.broadcast %457 : f32 to vector<2x256xf32>
    %459 = arith.mulf %458, %52 : vector<2x256xf32>
    %460 = arith.addf %452, %459 : vector<2x256xf32>
    %c80 = arith.constant 80 : index
    %461 = memref.load %arg1[%c80] : memref<98xf32, #tpu.memory_space<smem>>
    %462 = vector.broadcast %461 : f32 to vector<2x256xf32>
    %463 = arith.mulf %462, %129 : vector<2x256xf32>
    %464 = arith.addf %456, %463 : vector<2x256xf32>
    %c32 = arith.constant 32 : index
    %465 = memref.load %arg1[%c32] : memref<98xf32, #tpu.memory_space<smem>>
    %466 = vector.broadcast %465 : f32 to vector<2x256xf32>
    %467 = arith.mulf %466, %63 : vector<2x256xf32>
    %468 = arith.addf %460, %467 : vector<2x256xf32>
    %c81 = arith.constant 81 : index
    %469 = memref.load %arg1[%c81] : memref<98xf32, #tpu.memory_space<smem>>
    %470 = vector.broadcast %469 : f32 to vector<2x256xf32>
    %471 = arith.mulf %470, %140 : vector<2x256xf32>
    %472 = arith.addf %464, %471 : vector<2x256xf32>
    %c33 = arith.constant 33 : index
    %473 = memref.load %arg1[%c33] : memref<98xf32, #tpu.memory_space<smem>>
    %474 = vector.broadcast %473 : f32 to vector<2x256xf32>
    %475 = arith.mulf %474, %74 : vector<2x256xf32>
    %476 = arith.addf %468, %475 : vector<2x256xf32>
    %c82 = arith.constant 82 : index
    %477 = memref.load %arg1[%c82] : memref<98xf32, #tpu.memory_space<smem>>
    %478 = vector.broadcast %477 : f32 to vector<2x256xf32>
    %479 = arith.mulf %478, %151 : vector<2x256xf32>
    %480 = arith.addf %472, %479 : vector<2x256xf32>
    %c34 = arith.constant 34 : index
    %481 = memref.load %arg1[%c34] : memref<98xf32, #tpu.memory_space<smem>>
    %482 = vector.broadcast %481 : f32 to vector<2x256xf32>
    %483 = arith.mulf %482, %85 : vector<2x256xf32>
    %484 = arith.addf %476, %483 : vector<2x256xf32>
    %c83 = arith.constant 83 : index
    %485 = memref.load %arg1[%c83] : memref<98xf32, #tpu.memory_space<smem>>
    %486 = vector.broadcast %485 : f32 to vector<2x256xf32>
    %487 = arith.mulf %486, %162 : vector<2x256xf32>
    %488 = arith.addf %480, %487 : vector<2x256xf32>
    %489 = arith.addf %484, %488 : vector<2x256xf32>
    %490 = tpu.concatenate %489, %489 in 1 : vector<2x256xf32>, vector<2x256xf32> -> vector<2x512xf32>
    %c16_i32_65 = arith.constant 16 : i32
    %491 = vector.broadcast %c16_i32_65 : i32 to vector<2x256xi32>
    %492 = arith.addi %3, %491 : vector<2x256xi32>
    %c0_i32_66 = arith.constant 0 : i32
    %493 = vector.broadcast %c0_i32_66 : i32 to vector<2x256xi32>
    %494 = arith.cmpi sge, %492, %493 : vector<2x256xi32>
    %c16_i32_67 = arith.constant 16 : i32
    %495 = vector.broadcast %c16_i32_67 : i32 to vector<2x256xi32>
    %496 = arith.addi %3, %495 : vector<2x256xi32>
    %c256_i32_68 = arith.constant 256 : i32
    %497 = vector.broadcast %c256_i32_68 : i32 to vector<2x256xi32>
    %498 = arith.cmpi slt, %496, %497 : vector<2x256xi32>
    %499 = arith.andi %494, %498 : vector<2x256xi1>
    %500 = vector.extract_strided_slice %490 {offsets = [0, 16], sizes = [2, 256], strides = [1, 1]} : vector<2x512xf32> to vector<2x256xf32>
    %501 = arith.select %499, %500, %8 : vector<2x256xi1>, vector<2x256xf32>
    %502 = arith.addf %434, %501 : vector<2x256xf32>
    %c35 = arith.constant 35 : index
    %503 = memref.load %arg1[%c35] : memref<98xf32, #tpu.memory_space<smem>>
    %504 = vector.broadcast %503 : f32 to vector<2x256xf32>
    %505 = arith.mulf %504, %19 : vector<2x256xf32>
    %c84 = arith.constant 84 : index
    %506 = memref.load %arg1[%c84] : memref<98xf32, #tpu.memory_space<smem>>
    %507 = vector.broadcast %506 : f32 to vector<2x256xf32>
    %508 = arith.mulf %507, %96 : vector<2x256xf32>
    %c36 = arith.constant 36 : index
    %509 = memref.load %arg1[%c36] : memref<98xf32, #tpu.memory_space<smem>>
    %510 = vector.broadcast %509 : f32 to vector<2x256xf32>
    %511 = arith.mulf %510, %30 : vector<2x256xf32>
    %512 = arith.addf %505, %511 : vector<2x256xf32>
    %c85 = arith.constant 85 : index
    %513 = memref.load %arg1[%c85] : memref<98xf32, #tpu.memory_space<smem>>
    %514 = vector.broadcast %513 : f32 to vector<2x256xf32>
    %515 = arith.mulf %514, %107 : vector<2x256xf32>
    %516 = arith.addf %508, %515 : vector<2x256xf32>
    %c37 = arith.constant 37 : index
    %517 = memref.load %arg1[%c37] : memref<98xf32, #tpu.memory_space<smem>>
    %518 = vector.broadcast %517 : f32 to vector<2x256xf32>
    %519 = arith.mulf %518, %41 : vector<2x256xf32>
    %520 = arith.addf %512, %519 : vector<2x256xf32>
    %c86 = arith.constant 86 : index
    %521 = memref.load %arg1[%c86] : memref<98xf32, #tpu.memory_space<smem>>
    %522 = vector.broadcast %521 : f32 to vector<2x256xf32>
    %523 = arith.mulf %522, %118 : vector<2x256xf32>
    %524 = arith.addf %516, %523 : vector<2x256xf32>
    %c38 = arith.constant 38 : index
    %525 = memref.load %arg1[%c38] : memref<98xf32, #tpu.memory_space<smem>>
    %526 = vector.broadcast %525 : f32 to vector<2x256xf32>
    %527 = arith.mulf %526, %52 : vector<2x256xf32>
    %528 = arith.addf %520, %527 : vector<2x256xf32>
    %c87 = arith.constant 87 : index
    %529 = memref.load %arg1[%c87] : memref<98xf32, #tpu.memory_space<smem>>
    %530 = vector.broadcast %529 : f32 to vector<2x256xf32>
    %531 = arith.mulf %530, %129 : vector<2x256xf32>
    %532 = arith.addf %524, %531 : vector<2x256xf32>
    %c39 = arith.constant 39 : index
    %533 = memref.load %arg1[%c39] : memref<98xf32, #tpu.memory_space<smem>>
    %534 = vector.broadcast %533 : f32 to vector<2x256xf32>
    %535 = arith.mulf %534, %63 : vector<2x256xf32>
    %536 = arith.addf %528, %535 : vector<2x256xf32>
    %c88 = arith.constant 88 : index
    %537 = memref.load %arg1[%c88] : memref<98xf32, #tpu.memory_space<smem>>
    %538 = vector.broadcast %537 : f32 to vector<2x256xf32>
    %539 = arith.mulf %538, %140 : vector<2x256xf32>
    %540 = arith.addf %532, %539 : vector<2x256xf32>
    %c40 = arith.constant 40 : index
    %541 = memref.load %arg1[%c40] : memref<98xf32, #tpu.memory_space<smem>>
    %542 = vector.broadcast %541 : f32 to vector<2x256xf32>
    %543 = arith.mulf %542, %74 : vector<2x256xf32>
    %544 = arith.addf %536, %543 : vector<2x256xf32>
    %c89 = arith.constant 89 : index
    %545 = memref.load %arg1[%c89] : memref<98xf32, #tpu.memory_space<smem>>
    %546 = vector.broadcast %545 : f32 to vector<2x256xf32>
    %547 = arith.mulf %546, %151 : vector<2x256xf32>
    %548 = arith.addf %540, %547 : vector<2x256xf32>
    %c41 = arith.constant 41 : index
    %549 = memref.load %arg1[%c41] : memref<98xf32, #tpu.memory_space<smem>>
    %550 = vector.broadcast %549 : f32 to vector<2x256xf32>
    %551 = arith.mulf %550, %85 : vector<2x256xf32>
    %552 = arith.addf %544, %551 : vector<2x256xf32>
    %c90 = arith.constant 90 : index
    %553 = memref.load %arg1[%c90] : memref<98xf32, #tpu.memory_space<smem>>
    %554 = vector.broadcast %553 : f32 to vector<2x256xf32>
    %555 = arith.mulf %554, %162 : vector<2x256xf32>
    %556 = arith.addf %548, %555 : vector<2x256xf32>
    %557 = arith.addf %552, %556 : vector<2x256xf32>
    %558 = tpu.concatenate %557, %557 in 1 : vector<2x256xf32>, vector<2x256xf32> -> vector<2x512xf32>
    %c32_i32 = arith.constant 32 : i32
    %559 = vector.broadcast %c32_i32 : i32 to vector<2x256xi32>
    %560 = arith.addi %3, %559 : vector<2x256xi32>
    %c0_i32_69 = arith.constant 0 : i32
    %561 = vector.broadcast %c0_i32_69 : i32 to vector<2x256xi32>
    %562 = arith.cmpi sge, %560, %561 : vector<2x256xi32>
    %c32_i32_70 = arith.constant 32 : i32
    %563 = vector.broadcast %c32_i32_70 : i32 to vector<2x256xi32>
    %564 = arith.addi %3, %563 : vector<2x256xi32>
    %c256_i32_71 = arith.constant 256 : i32
    %565 = vector.broadcast %c256_i32_71 : i32 to vector<2x256xi32>
    %566 = arith.cmpi slt, %564, %565 : vector<2x256xi32>
    %567 = arith.andi %562, %566 : vector<2x256xi1>
    %568 = vector.extract_strided_slice %558 {offsets = [0, 32], sizes = [2, 256], strides = [1, 1]} : vector<2x512xf32> to vector<2x256xf32>
    %569 = arith.select %567, %568, %8 : vector<2x256xi1>, vector<2x256xf32>
    %570 = arith.addf %502, %569 : vector<2x256xf32>
    %c42 = arith.constant 42 : index
    %571 = memref.load %arg1[%c42] : memref<98xf32, #tpu.memory_space<smem>>
    %572 = vector.broadcast %571 : f32 to vector<2x256xf32>
    %573 = arith.mulf %572, %19 : vector<2x256xf32>
    %c91 = arith.constant 91 : index
    %574 = memref.load %arg1[%c91] : memref<98xf32, #tpu.memory_space<smem>>
    %575 = vector.broadcast %574 : f32 to vector<2x256xf32>
    %576 = arith.mulf %575, %96 : vector<2x256xf32>
    %c43 = arith.constant 43 : index
    %577 = memref.load %arg1[%c43] : memref<98xf32, #tpu.memory_space<smem>>
    %578 = vector.broadcast %577 : f32 to vector<2x256xf32>
    %579 = arith.mulf %578, %30 : vector<2x256xf32>
    %580 = arith.addf %573, %579 : vector<2x256xf32>
    %c92 = arith.constant 92 : index
    %581 = memref.load %arg1[%c92] : memref<98xf32, #tpu.memory_space<smem>>
    %582 = vector.broadcast %581 : f32 to vector<2x256xf32>
    %583 = arith.mulf %582, %107 : vector<2x256xf32>
    %584 = arith.addf %576, %583 : vector<2x256xf32>
    %c44 = arith.constant 44 : index
    %585 = memref.load %arg1[%c44] : memref<98xf32, #tpu.memory_space<smem>>
    %586 = vector.broadcast %585 : f32 to vector<2x256xf32>
    %587 = arith.mulf %586, %41 : vector<2x256xf32>
    %588 = arith.addf %580, %587 : vector<2x256xf32>
    %c93 = arith.constant 93 : index
    %589 = memref.load %arg1[%c93] : memref<98xf32, #tpu.memory_space<smem>>
    %590 = vector.broadcast %589 : f32 to vector<2x256xf32>
    %591 = arith.mulf %590, %118 : vector<2x256xf32>
    %592 = arith.addf %584, %591 : vector<2x256xf32>
    %c45 = arith.constant 45 : index
    %593 = memref.load %arg1[%c45] : memref<98xf32, #tpu.memory_space<smem>>
    %594 = vector.broadcast %593 : f32 to vector<2x256xf32>
    %595 = arith.mulf %594, %52 : vector<2x256xf32>
    %596 = arith.addf %588, %595 : vector<2x256xf32>
    %c94 = arith.constant 94 : index
    %597 = memref.load %arg1[%c94] : memref<98xf32, #tpu.memory_space<smem>>
    %598 = vector.broadcast %597 : f32 to vector<2x256xf32>
    %599 = arith.mulf %598, %129 : vector<2x256xf32>
    %600 = arith.addf %592, %599 : vector<2x256xf32>
    %c46 = arith.constant 46 : index
    %601 = memref.load %arg1[%c46] : memref<98xf32, #tpu.memory_space<smem>>
    %602 = vector.broadcast %601 : f32 to vector<2x256xf32>
    %603 = arith.mulf %602, %63 : vector<2x256xf32>
    %604 = arith.addf %596, %603 : vector<2x256xf32>
    %c95 = arith.constant 95 : index
    %605 = memref.load %arg1[%c95] : memref<98xf32, #tpu.memory_space<smem>>
    %606 = vector.broadcast %605 : f32 to vector<2x256xf32>
    %607 = arith.mulf %606, %140 : vector<2x256xf32>
    %608 = arith.addf %600, %607 : vector<2x256xf32>
    %c47 = arith.constant 47 : index
    %609 = memref.load %arg1[%c47] : memref<98xf32, #tpu.memory_space<smem>>
    %610 = vector.broadcast %609 : f32 to vector<2x256xf32>
    %611 = arith.mulf %610, %74 : vector<2x256xf32>
    %612 = arith.addf %604, %611 : vector<2x256xf32>
    %c96 = arith.constant 96 : index
    %613 = memref.load %arg1[%c96] : memref<98xf32, #tpu.memory_space<smem>>
    %614 = vector.broadcast %613 : f32 to vector<2x256xf32>
    %615 = arith.mulf %614, %151 : vector<2x256xf32>
    %616 = arith.addf %608, %615 : vector<2x256xf32>
    %c48 = arith.constant 48 : index
    %617 = memref.load %arg1[%c48] : memref<98xf32, #tpu.memory_space<smem>>
    %618 = vector.broadcast %617 : f32 to vector<2x256xf32>
    %619 = arith.mulf %618, %85 : vector<2x256xf32>
    %620 = arith.addf %612, %619 : vector<2x256xf32>
    %c97 = arith.constant 97 : index
    %621 = memref.load %arg1[%c97] : memref<98xf32, #tpu.memory_space<smem>>
    %622 = vector.broadcast %621 : f32 to vector<2x256xf32>
    %623 = arith.mulf %622, %162 : vector<2x256xf32>
    %624 = arith.addf %616, %623 : vector<2x256xf32>
    %625 = arith.addf %620, %624 : vector<2x256xf32>
    %626 = tpu.concatenate %625, %625 in 1 : vector<2x256xf32>, vector<2x256xf32> -> vector<2x512xf32>
    %c48_i32 = arith.constant 48 : i32
    %627 = vector.broadcast %c48_i32 : i32 to vector<2x256xi32>
    %628 = arith.addi %3, %627 : vector<2x256xi32>
    %c0_i32_72 = arith.constant 0 : i32
    %629 = vector.broadcast %c0_i32_72 : i32 to vector<2x256xi32>
    %630 = arith.cmpi sge, %628, %629 : vector<2x256xi32>
    %c48_i32_73 = arith.constant 48 : i32
    %631 = vector.broadcast %c48_i32_73 : i32 to vector<2x256xi32>
    %632 = arith.addi %3, %631 : vector<2x256xi32>
    %c256_i32_74 = arith.constant 256 : i32
    %633 = vector.broadcast %c256_i32_74 : i32 to vector<2x256xi32>
    %634 = arith.cmpi slt, %632, %633 : vector<2x256xi32>
    %635 = arith.andi %630, %634 : vector<2x256xi1>
    %636 = vector.extract_strided_slice %626 {offsets = [0, 48], sizes = [2, 256], strides = [1, 1]} : vector<2x512xf32> to vector<2x256xf32>
    %637 = arith.select %635, %636, %8 : vector<2x256xi1>, vector<2x256xf32>
    %638 = arith.addf %570, %637 : vector<2x256xf32>
    %639 = arith.negf %638 : vector<2x256xf32>
    %640 = math.exp %639 : vector<2x256xf32>
    %cst_75 = arith.constant 1.000000e+00 : f32
    %641 = vector.broadcast %cst_75 : f32 to vector<2x256xf32>
    %642 = arith.addf %641, %640 : vector<2x256xf32>
    %643 = arith.divf %641, %642 : vector<2x256xf32>
    %c0_76 = arith.constant 0 : index
    %c0_77 = arith.constant 0 : index
    %644 = vector.load %arg3[%c0_76, %c0_77] : memref<2x256xf32, #tpu.memory_space<vmem>>, vector<2x256xf32>
    tpu.vector_store %arg3[%c0_76, %c0_77], %643 {strides = array<i32>} : memref<2x256xf32, #tpu.memory_space<vmem>>, vector<2x256xf32>,
    return
  }
  func.func @transform_0(%arg0: i32) -> i32 {
    %c0_i32 = arith.constant 0 : i32
    %c0_i32_0 = arith.constant 0 : i32
    return %c0_i32 : i32
  }
  func.func @transform_1(%arg0: i32) -> (i32, i32, i32) {
    %c0_i32 = arith.constant 0 : i32
    %c0_i32_0 = arith.constant 0 : i32
    %c0_i32_1 = arith.constant 0 : i32
    return %arg0, %c0_i32, %c0_i32_0 : i32, i32, i32
  }
  func.func @transform_2(%arg0: i32) -> (i32, i32) {
    %c0_i32 = arith.constant 0 : i32
    %c0_i32_0 = arith.constant 0 : i32
    return %arg0, %c0_i32 : i32, i32
  }
}

</mosaic_0001>

<bundles_post_ra>
// kernel: tpu_custom_call.1
= control target key start
LH: loop header
LB: loop body
LE: loop exit
PB: predicated region body
PF: predicated region fallthrough
CT: control target
= control target key end

     0   :  { %s2608_s0 = inlined_call_operand.hbm [shape: f32[98], index: 0, kind: input, shape index: {}]   ;;  %s2609_s1 = inlined_call_operand.hbm [shape: f32[2,4,256], index: 1, kind: input, shape index: {}]   ;;  %s2610_s2 = inlined_call_operand.hbm [shape: f32[2,256], index: 2, kind: output, shape index: {}]  }
   0x1   :  { %2719 = sst [smem:[#allocation139_spill]] %s2610_s2 }
   0x2   :  { %7 = vsyncpa [#allocation5], 0 }
   0x3   :  { %8 = vsyncpa [#allocation3], 0 }
   0x4   :  { %9 = vsyncpa [#allocation4], 0  ;;  %s1197_s11 = scalar_lea.hbm %s2608_s0, 16 }
   0x5   :  { %p1198_p0 = scmp.ne.s32.totalorder %s2608_s0, %s1197_s11  ;;  %p1201_p1 = scmp.lt.u32.totalorder %s1197_s11, %s2608_s0 }
   0x7   :  { %p1203_p2 = pnand %p1201_p1, %p1198_p0 }
   0x9   :  { %1206 = shalt.err (!%p1203_p2)
}
   0xa   :  { %s1257_s16 = smov [#allocation2]   ;;  %s1258_s19 = smov [#allocation6]  }
   0xb   :  { %17 = dma.hbm_to_smem %s2608_s0, 16, %s1257_s16, [#allocation5]  }
   0xc   :  { %s23_s20 = sshll.u32 %s1258_s19, 4  ;;  %s1207_s23 = scalar_lea.hbm %s2609_s1, 256  ;;  %s24_s20 = int_to_ptr.vmem [resolvable:$true] %s23_s20 }
   0xd   :  { %p1208_p3 = scmp.ne.s32.totalorder %s2609_s1, %s1207_s23  ;;  %p1211_p4 = scmp.lt.u32.totalorder %s1207_s23, %s2609_s1 }
   0xf   :  { %p1213_p5 = pnand %p1211_p4, %p1208_p3 }
  0x11   :  { %1216 = shalt.err (!%p1213_p5)
}
  0x12   :  { %s1217_s28 = scalar_lea.vmem %s24_s20, 256  ;;  %p1222_p7 = scmp.lt.s32.totalorder %s24_s20, %s24_s20 }
  0x13   :  { %p1218_p6 = scmp.ne.s32.totalorder %s24_s20, %s1217_s28  ;;  %p1223_p8 = scmp.lt.s32.totalorder %s1217_s28, %s1217_s28 }
  0x15   :  { %p1224_p9 = por %p1223_p8, %p1222_p7 }
  0x17   :  { %p1225_p10 = pnand %p1224_p9, %p1218_p6 }
  0x19   :  { %1228 = shalt.err (!%p1225_p10)
}
  0x1a   :  { %s1259_s0 = smov 128   ;;  %s1260_s29 = smov 8  }
  0x1b   :  { %29 = dma.hbm_to_vmem [thread:$0]  %s2609_s1, 256, %s24_s20, [#allocation3], %s1259_s0, %s1259_s0, %s1260_s29  }
  0x1c   :  { %1251 = dma.done.wait [#allocation5], 16  }
  0x1d   :  { %1252 = vsyncadd [#allocation5], 4294967280 }
  0x1e   :  { %1253 = dma.done.wait [#allocation3], 256  }
  0x1f   :  { %1254 = vsyncadd [#allocation3], 4294967040 }
  0x20   :  { %36 = sfence }
  0x21   :  { %v37_v0 = vld [vmem:[#allocation6] sm:$0xff]  ;;  %v38_v1 = vld [vmem:[#allocation6 + $0x8] sm:$0xff]  ;;  %vm45_vm0 = vcmask 1043456   ;;  %vm111_vm1 = vcmask 1041409   ;;  %s1261_s1 = smov 2   ;;  %s1262_s4 = smov 3  }
  0x22   :  { %v46_v2 = vsel %vm45_vm0, %v37_v0, 0.0  ;;  %v60_v3 = vsel %vm45_vm0, %v38_v1, 0.0  ;;  %v74_v4 = vsel %vm45_vm0, %v37_v0, -inf  ;;  %v88_v5 = vsel %vm45_vm0, %v38_v1, -inf  ;;  %s1263_s5 = smov 1   ;;  %s1264_s6 = smov 127  }
  0x23   :  { %v47_v6 = vrot.slane %v46_v2, 4  ;;  %v61_v7 = vrot.slane %v60_v3, 4  ;;  %v75_v8 = vrot.slane %v74_v4, 4  ;;  %v89_v9 = vrot.slane %v88_v5, 4  ;;  %s1265_s7 = smov 126   ;;  %s1266_s8 = smov 125  }
  0x24   :  { %v41_v10 = vcombine.high %v37_v0, %v37_v0  ;;  %v42_v11 = vcombine.high %v38_v1, %v38_v1  ;;  %s1357_s9 = sld [smem:[#allocation2]]  ;;  %s1359_s10 = sld [smem:[#allocation2 + $0x7]]  ;;  %v102_v0 = vlaneseq  ;;  %vm136_vm2 = vcmask 23552  }
  0x25   :  { %v48_v12 = vadd.f32 %v47_v6, %v46_v2  ;;  %v62_v13 = vadd.f32 %v61_v7, %v60_v3  ;;  %v76_v14 = vmax.f32 %v74_v4, %v75_v8  ;;  %v90_v15 = vmax.f32 %v88_v5, %v89_v9  ;;  %s1361_s11 = sld [smem:[#allocation2 + $0xe]]  ;;  %s1363_s12 = sld [smem:[#allocation2 + $0x15]] }
  0x26   :  { %v53_v16 = vsel %vm45_vm0, %v41_v10, 0.0  ;;  %v67_v17 = vsel %vm45_vm0, %v42_v11, 0.0  ;;  %v81_v18 = vsel %vm45_vm0, %v41_v10, -inf  ;;  %v95_v19 = vsel %vm45_vm0, %v42_v11, -inf  ;;  %s1365_s13 = sld [smem:[#allocation2 + $0x1c]]  ;;  %s1367_s14 = sld [smem:[#allocation2 + $0x23]] }
  0x27   :  { %v49_v20 = vrot.slane %v48_v12, 2  ;;  %v63_v21 = vrot.slane %v62_v13, 2  ;;  %v77_v22 = vrot.slane %v76_v14, 2  ;;  %v91_v23 = vrot.slane %v90_v15, 2  ;;  %s1369_s15 = sld [smem:[#allocation2 + $0x2a]]  ;;  %s1371_s16 = sld [smem:[#allocation2 + $0x31]] }
  0x28   :  { %v54_v24 = vrot.slane %v53_v16, 4  ;;  %v68_v25 = vrot.slane %v67_v17, 4  ;;  %v82_v26 = vrot.slane %v81_v18, 4  ;;  %v96_v27 = vrot.slane %v95_v19, 4  ;;  %s1373_s17 = sld [smem:[#allocation2 + $0x38]]  ;;  %s1375_s18 = sld [smem:[#allocation2 + $0x3f]] }
  0x29   :  { %v50_v28 = vadd.f32 %v49_v20, %v48_v12  ;;  %v64_v29 = vadd.f32 %v63_v21, %v62_v13  ;;  %v78_v30 = vmax.f32 %v76_v14, %v77_v22  ;;  %v92_v31 = vmax.f32 %v90_v15, %v91_v23  ;;  %s1377_s19 = sld [smem:[#allocation2 + $0x46]]  ;;  %s1379_s20 = sld [smem:[#allocation2 + $0x4d]] }
  0x2a   :  { %v55_v32 = vadd.f32 %v54_v24, %v53_v16  ;;  %v69_v33 = vadd.f32 %v68_v25, %v67_v17  ;;  %v83_v34 = vmax.f32 %v81_v18, %v82_v26  ;;  %v97_v35 = vmax.f32 %v95_v19, %v96_v27  ;;  %2720 = sst [smem:[#allocation11_spill]] %s1357_s9  ;;  %s1381_s21 = sld [smem:[#allocation2 + $0x54]] }
  0x2b   :  { %v51_v36 = vrot.slane %v50_v28, 1  ;;  %v65_v37 = vrot.slane %v64_v29, 1  ;;  %v79_v38 = vrot.slane %v78_v30, 1  ;;  %v93_v39 = vrot.slane %v92_v31, 1  ;;  %2721 = sst [smem:[#allocation12_spill]] %s1359_s10  ;;  %s1383_s22 = sld [smem:[#allocation2 + $0x5b]] }
  0x2c   :  { %v56_v40 = vrot.slane %v55_v32, 2  ;;  %v70_v41 = vrot.slane %v69_v33, 2  ;;  %v84_v42 = vrot.slane %v83_v34, 2  ;;  %v98_v43 = vrot.slane %v97_v35, 2  ;;  %2722 = sst [smem:[#allocation13_spill]] %s1361_s11  ;;  %s1387_s24 = sld [smem:[#allocation2 + $0x39]] }
  0x2d   :  { %v52_v44 = vadd.f32 %v51_v36, %v50_v28  ;;  %v66_v45 = vadd.f32 %v65_v37, %v64_v29  ;;  %v80_v46 = vmax.f32 %v78_v30, %v79_v38  ;;  %v94_v47 = vmax.f32 %v92_v31, %v93_v39  ;;  %2723 = sst [smem:[#allocation14_spill]] %s1363_s12  ;;  %s1385_s23 = sld [smem:[#allocation2 + $0x32]] }
  0x2e   :  { %v57_v48 = vadd.f32 %v56_v40, %v55_v32  ;;  %v71_v49 = vadd.f32 %v70_v41, %v69_v33  ;;  %v85_v50 = vmax.f32 %v83_v34, %v84_v42  ;;  %v99_v51 = vmax.f32 %v97_v35, %v98_v43  ;;  %2724 = sst [smem:[#allocation15_spill]] %s1365_s13  ;;  %s1389_s25 = sld [smem:[#allocation2 + $0x40]] }
  0x2f   :  { %v1322_v52 = vsel %vm111_vm1, %v66_v45, %v52_v44  ;;  %v1327_v57 = vsel %vm111_vm1, %v94_v47, %v80_v46  ;;  %2725 = sst [smem:[#allocation16_spill]] %s1367_s14  ;;  %s1391_s26 = sld [smem:[#allocation2 + $0x47]]  ;;  %v1393_v1 = vand.u32 127, %v102_v0  ;;  %v309_v7 = vstv %s1357_s9 }
  0x30   :  { %153 = vrot.lane.b32.xlu1 %v1322_v52, %s1261_s1  ;;  %134 = vrot.lane.b32.xlu0 %v1322_v52, %s1262_s4  ;;  %v58_v53 = vrot.slane %v57_v48, 1  ;;  %v72_v54 = vrot.slane %v71_v49, 1  ;;  %v86_v55 = vrot.slane %v85_v50, 1  ;;  %v100_v56 = vrot.slane %v99_v51, 1  ;;  %2726 = sst [smem:[#allocation17_spill]] %s1369_s15  ;;  %s1397_s28 = sld [smem:[#allocation2 + $0x55]] }
  0x31   :  { %2727 = sst [smem:[#allocation18_spill]] %s1371_s16  ;;  %2738 = vst [vmem:[#allocation29_spill] sm:$0xff] %v1393_v1  ;;  %s1395_s27 = sld [smem:[#allocation2 + $0x4e]]  ;;  %v1412_v2 = vadd.s32 128, %v1393_v1  ;;  %v1431_v3 = vand.u32 15, %v1393_v1  ;;  %v414_v8 = vstv %s1359_s10  ;;  %v519_v9 = vstv %s1361_s11 }
  0x32   :  { %v59_v58 = vadd.f32 %v58_v53, %v57_v48  ;;  %v73_v59 = vadd.f32 %v72_v54, %v71_v49  ;;  %v87_v60 = vmax.f32 %v85_v50, %v86_v55  ;;  %v101_v61 = vmax.f32 %v99_v51, %v100_v56  ;;  %2728 = sst [smem:[#allocation19_spill]] %s1373_s17  ;;  %s1399_s0 = sld [smem:[#allocation2 + $0x5c]] }
  0x33   :  { %2729 = sst [smem:[#allocation20_spill]] %s1375_s18  ;;  %s1403_s30 = sld [smem:[#allocation2 + $0x8]]  ;;  %2747 = vst [vmem:[#allocation38_spill] sm:$0xff] %v1412_v2  ;;  %v1434_v4 = vand.u32 15, %v1412_v2  ;;  %v1453_v5 = vadd.s32 4294967293, %v1431_v3  ;;  %v624_v10 = vstv %s1363_s12  ;;  %v716_v11 = vstv %s1365_s13 }
  0x34   :  { %248 = vrot.lane.b32.xlu1 %v1327_v57, %s1262_s4  ;;  %v1331_v62 = vsel %vm111_vm1, %v73_v59, %v59_v58  ;;  %v1335_v63 = vsel %vm111_vm1, %v101_v61, %v87_v60  ;;  %2730 = sst [smem:[#allocation21_spill]] %s1377_s19  ;;  %s1401_s29 = sld [smem:[#allocation2 + $0x1]]  ;;  %v1489_v21 = vadd.s32 4294967294, %v1431_v3  ;;  %v1518_v34 = vadd.s32 4294967295, %v1431_v3 }
  0x35   :  { %132 = vrot.lane.b32.xlu0 %v1331_v62, %s1262_s4  ;;  %2731 = sst [smem:[#allocation22_spill]] %s1379_s20  ;;  %s1405_s3 = sld [smem:[#allocation2 + $0xf]]  ;;  %v1456_v6 = vadd.s32 4294967293, %v1434_v4  ;;  %v1492_v22 = vadd.s32 4294967294, %v1434_v4  ;;  %v1521_v35 = vadd.s32 4294967295, %v1434_v4  ;;  %v1553_v49 = vadd.s32 1, %v1431_v3 }
  0x36   :  { %2732 = sst [smem:[#allocation23_spill]] %s1381_s21  ;;  %s1422_s2 = sld [smem:[#allocation2 + $0x10]]  ;;  %v1564_v55 = vadd.s32 1, %v1434_v4  ;;  %v1567_v56 = vadd.s32 2, %v1431_v3  ;;  %v1576_v60 = vadd.s32 2, %v1434_v4  ;;  %v1579_v61 = vadd.s32 3, %v1431_v3 }
  0x37   :  { %2733 = sst [smem:[#allocation24_spill]] %s1383_s22  ;;  %s1483_s13 = sld [smem:[#allocation2 + $0x6]]  ;;  %v1586_v0 = vadd.s32 3, %v1434_v4  ;;  %vm126_vm3 = vcmp.ge.s32.totalorder %v1453_v5, 0  ;;  %vm127_vm4 = vcmp.ge.s32.totalorder %v1456_v6, 0  ;;  %vm155_vm5 = vcmask 15360  }
  0x38   :  { %258 = vrot.lane.b32.xlu1 %v1327_v57, %s1261_s1  ;;  %2734 = sst [smem:[#allocation25_spill]] %s1385_s23  ;;  %s1475_s9 = sld [smem:[#allocation2 + $0x5]]  ;;  %vm145_vm6 = vcmp.ge.s32.totalorder %v1489_v21, 0  ;;  %vm146_vm7 = vcmp.ge.s32.totalorder %v1492_v22, 0  ;;  %vm174_vm8 = vcmask 7168   ;;  %vm164_vm9 = vcmp.ge.s32.totalorder %v1518_v34, 0 }
  0x39   :  { %246 = vrot.lane.b32.xlu0 %v1335_v63, %s1262_s4  ;;  %2735 = sst [smem:[#allocation26_spill]] %s1387_s24  ;;  %s1409_s4 = sld [smem:[#allocation2 + $0x1d]]  ;;  %vm165_vm10 = vcmp.ge.s32.totalorder %v1521_v35, 0  ;;  %vm201_vm11 = vcmask 1039360   ;;  %vm193_vm12 = vcmp.lt.s32.totalorder %v1553_v49, 16  ;;  %vm194_vm13 = vcmp.lt.s32.totalorder %v1564_v55, 16 }
  0x3a   :  { %2736 = sst [smem:[#allocation27_spill]] %s1389_s25  ;;  %s1485_s15 = sld [smem:[#allocation2 + $0xa]]  ;;  %vm220_vm14 = vcmask 1031168   ;;  %vm212_vm15 = vcmp.lt.s32.totalorder %v1567_v56, 16  ;;  %vm213_vm0 = vcmp.lt.s32.totalorder %v1576_v60, 16  ;;  %vm239_vm1 = vcmask 1022976  }
  0x3b   :  { %2737 = sst [smem:[#allocation28_spill]] %s1391_s26  ;;  %s1495_s20 = sld [smem:[#allocation2 + $0x37]] }
  0x3c   :  { %172 = vrot.lane.b32.xlu1 %v1322_v52, %s1263_s5  ;;  %2739 = sst [smem:[#allocation30_spill]] %s1395_s27  ;;  %s1497_s21 = sld [smem:[#allocation2 + $0x3b]] }
  0x3d   :  { %256 = vrot.lane.b32.xlu0 %v1335_v63, %s1261_s1  ;;  %2740 = sst [smem:[#allocation31_spill]] %s1397_s28  ;;  %s1505_s12 = sld [smem:[#allocation2 + $0x3c]] }
  0x3e   :  { %2741 = sst [smem:[#allocation32_spill]] %s1399_s0  ;;  %s1503_s22 = sld [smem:[#allocation2 + $0xb]] }
  0x3f   :  { %2742 = sst [smem:[#allocation33_spill]] %s1401_s29  ;;  %s1525_s16 = sld [smem:[#allocation2 + $0x11]] }
  0x40   :  { %151 = vrot.lane.b32.xlu1 %v1331_v62, %s1261_s1  ;;  %2743 = sst [smem:[#allocation34_spill]] %s1403_s30  ;;  %s1424_s30 = sld [smem:[#allocation2 + $0x17]]  ;;  %v446_v59 = vstv %s1485_s15 }
  0x41   :  { %170 = vrot.lane.b32.xlu0 %v1331_v62, %s1263_s5  ;;  %2744 = sst [smem:[#allocation35_spill]] %s1405_s3  ;;  %s1407_s1 = sld [smem:[#allocation2 + $0x16]]  ;;  %v1635_v48 = vmul.f32 %v446_v59, %v1331_v62 }
  0x42   :  { %2746 = sst [smem:[#allocation37_spill]] %s1409_s4  ;;  %s1426_s3 = sld [smem:[#allocation2 + $0x1e]]  ;;  %v452_v54 = vstv %s1497_s21 }
  0x43   :  { %2752 = sst [smem:[#allocation43_spill]] %s1422_s2  ;;  %s1438_s2 = sld [smem:[#allocation2 + $0x33]]  ;;  %v1630_v46 = vmul.f32 %v452_v54, %v1327_v57  ;;  %v1645_v40 = vmul.f32 %v452_v54, %v1335_v63 }
  0x44   :  { %268 = vrot.lane.b32.xlu1 %v1327_v57, %s1263_s5  ;;  %2766 = sst [smem:[#allocation57_spill]] %s1483_s13  ;;  %s1513_s25 = sld [smem:[#allocation2 + $0x3d]] }
  0x45   :  { %266 = vrot.lane.b32.xlu0 %v1335_v63, %s1263_s5  ;;  %s1414_s5 = sld [smem:[#allocation2 + $0x24]]  ;;  %2770 = sst [smem:[#allocation58_spill]] %s1495_s20  ;;  %v551_v3 = vstv %s1525_s16 }
  0x46   :  { %2753 = sst [smem:[#allocation44_spill]] %s1424_s30  ;;  %s1442_s30 = sld [smem:[#allocation2 + $0x41]]  ;;  %v1653_v47 = vmul.f32 %v551_v3, %v1322_v52  ;;  %v1668_v43 = vmul.f32 %v551_v3, %v1331_v62 }
  0x47   :  { %2745 = sst [smem:[#allocation36_spill]] %s1407_s1  ;;  %s1428_s1 = sld [smem:[#allocation2 + $0x25]] }
  0x48   :  { %199 = vrot.lane.b32.xlu1 %v1331_v62, %s1264_s6  ;;  %2754 = sst [smem:[#allocation45_spill]] %s1426_s3  ;;  %s1446_s3 = sld [smem:[#allocation2 + $0x4f]]  ;;  %2797 = vst [vmem:[#allocation67_spill] sm:$0xff] %v1668_v43 }
  0x49   :  { %197 = vrot.lane.b32.xlu0 %v1322_v52, %s1264_s6  ;;  %2757 = sst [smem:[#allocation48_spill]] %s1438_s2  ;;  %s1511_s20 = sld [smem:[#allocation2 + $0xc]] }
  0x4a   :  { %2778 = sst [smem:[#allocation59_spill]] %s1513_s25  ;;  %s1523_s29 = sld [smem:[#allocation2 + $0xd]] }
  0x4b   :  { %2748 = sst [smem:[#allocation39_spill]] %s1414_s5  ;;  %s1450_s5 = sld [smem:[#allocation2 + $0x5d]] }
  0x4c   :  { %280 = vrot.lane.b32.xlu1 %v1335_v63, %s1264_s6  ;;  %2759 = sst [smem:[#allocation50_spill]] %s1442_s30  ;;  %s1459_s30 = sld [smem:[#allocation2 + $0x3]] }
  0x4d   :  { %278 = vrot.lane.b32.xlu0 %v1327_v57, %s1264_s6  ;;  %s1416_s6 = sld [smem:[#allocation2 + $0x2b]]  ;;  %2755 = sst [smem:[#allocation46_spill]] %s1428_s1 }
  0x4e   :  { %s1444_s1 = sld [smem:[#allocation2 + $0x48]]  ;;  %2761 = sst [smem:[#allocation52_spill]] %s1446_s3 }
  0x4f   :  { %s1477_s3 = sld [smem:[#allocation2 + $0x36]]  ;;  %s1533_s19 = sld [smem:[#allocation2 + $0x42]] }
  0x50   :  { %218 = vrot.lane.b32.xlu1 %v1331_v62, %s1265_s7  ;;  %2781 = sst [smem:[#allocation60_spill]] %s1523_s29  ;;  %s1531_s17 = sld [smem:[#allocation2 + $0x3e]] }
  0x51   :  { %216 = vrot.lane.b32.xlu0 %v1322_v52, %s1265_s7  ;;  %2763 = sst [smem:[#allocation54_spill]] %s1450_s5  ;;  %s1467_s5 = sld [smem:[#allocation2 + $0x4]] }
  0x52   :  { %s1539_s25 = sld [smem:[#allocation2 + $0x12]]  ;;  %s1547_s18 = sld [smem:[#allocation2 + $0x13]]  ;;  %v341_v50 = vstv %s1459_s30 }
  0x53   :  { %2749 = sst [smem:[#allocation40_spill]] %s1416_s6  ;;  %s1448_s6 = sld [smem:[#allocation2 + $0x56]]  ;;  %v1589_v53 = vmul.f32 %v341_v50, %v1322_v52  ;;  %v1601_v58 = vmul.f32 %v341_v50, %v1331_v62 }
  0x54   :  { %290 = vrot.lane.b32.xlu1 %v1335_v63, %s1265_s7  ;;  %2760 = sst [smem:[#allocation51_spill]] %s1444_s1  ;;  %s1461_s1 = sld [smem:[#allocation2 + $0x34]] }
  0x55   :  { %288 = vrot.lane.b32.xlu0 %v1327_v57, %s1265_s7  ;;  %s1418_s7 = sld [smem:[#allocation2 + $0x2]]  ;;  %s1549_s4 = sld [smem:[#allocation2 + $0x1f]]  ;;  %v557_v44 = vstv %s1533_s19 }
  0x56   :  { %2783 = sst [smem:[#allocation61_spill]] %s1531_s17  ;;  %s1557_s24 = sld [smem:[#allocation2 + $0x44]]  ;;  %v1656_v50 = vmul.f32 %v557_v44, %v1327_v57  ;;  %v1678_v37 = vmul.f32 %v557_v44, %v1335_v63 }
  0x57   :  { %2764 = sst [smem:[#allocation55_spill]] %s1467_s5  ;;  %s1559_s26 = sld [smem:[#allocation2 + $0x14]] }
  0x58   :  { %237 = vrot.lane.b32.xlu1 %v1331_v62, %s1266_s8  ;;  %s1569_s0 = sld [smem:[#allocation2 + $0x45]]  ;;  %s1581_s30 = sld [smem:[#allocation2 + $0x20]]  ;;  %2796 = vst [vmem:[#allocation66_spill] sm:$0xff] %v1656_v50  ;;  %2798 = vst [vmem:[#allocation68_spill] sm:$0xff] %v1678_v37 }
  0x59   :  { %235 = vrot.lane.b32.xlu0 %v1322_v52, %s1266_s8  ;;  %2762 = sst [smem:[#allocation53_spill]] %s1448_s6  ;;  %s1469_s6 = sld [smem:[#allocation2 + $0x35]] }
  0x5a   :  { %v347_v51 = vstv %s1461_s1  ;;  %s1583_s1 = sld [smem:[#allocation2 + $0x51]]  ;;  %s1597_s11 = sld [smem:[#allocation2 + $0x26]] }
  0x5b   :  { %2750 = sst [smem:[#allocation41_spill]] %s1418_s7  ;;  %v1592_v42 = vmul.f32 %v347_v51, %v1327_v57  ;;  %s1595_s14 = sld [smem:[#allocation2 + $0x21]]  ;;  %v1604_v4 = vmul.f32 %v347_v51, %v1335_v63  ;;  %v1621_v51 = vmul.f32 %v446_v59, %v1322_v52  ;;  %v748_v41 = vstv %s1549_s4 }
  0x5c   :  { %300 = vrot.lane.b32.xlu1 %v1335_v63, %s1266_s8  ;;  %s1436_s7 = sld [smem:[#allocation2 + $0x2c]]  ;;  %s1607_s29 = sld [smem:[#allocation2 + $0x52]]  ;;  %v1688_v54 = vmul.f32 %v748_v41, %v1331_v62  ;;  %v1696_v39 = vmul.f32 %v748_v41, %v1322_v52 }
  0x5d   :  { %298 = vrot.lane.b32.xlu0 %v1327_v57, %s1266_s8  ;;  %s1420_s8 = sld [smem:[#allocation2 + $0x9]]  ;;  %s1609_s2 = sld [smem:[#allocation2 + $0x57]] }
  0x5e   :  { %2789 = sst [smem:[#allocation63_spill]] %s1581_s30  ;;  %s1617_s10 = sld [smem:[#allocation2 + $0x53]]  ;;  %2800 = vst [vmem:[#allocation70_spill] sm:$0xff] %v1688_v54  ;;  %2802 = vst [vmem:[#allocation72_spill] sm:$0xff] %v1696_v39 }
  0x5f   :  { %2765 = sst [smem:[#allocation56_spill]] %s1469_s6  ;;  %s1615_s5 = sld [smem:[#allocation2 + $0x22]] }
  0x60   :  { %s1625_s21 = sld [smem:[#allocation2 + $0x27]]  ;;  %s1627_s6 = sld [smem:[#allocation2 + $0x58]]  ;;  %v853_v36 = vstv %s1597_s11 }
  0x61   :  { %2791 = sst [smem:[#allocation64_spill]] %s1595_s14  ;;  %s1637_s28 = sld [smem:[#allocation2 + $0x28]]  ;;  %v1711_v41 = vmul.f32 %v853_v36, %v1331_v62  ;;  %v1730_v27 = vmul.f32 %v853_v36, %v1322_v52 }
  0x62   :  { %2756 = sst [smem:[#allocation47_spill]] %s1436_s7  ;;  %s1639_s13 = sld [smem:[#allocation2 + $0x2d]] }
  0x63   :  { %2751 = sst [smem:[#allocation42_spill]] %s1420_s8  ;;  %s1440_s8 = sld [smem:[#allocation2 + $0x3a]]  ;;  %v859_v32 = vstv %s1609_s2  ;;  %2805 = vst [vmem:[#allocation75_spill] sm:$0xff] %v1711_v41  ;;  %2810 = vst [vmem:[#allocation80_spill] sm:$0xff] %v1730_v27 }
  0x64   :  { %s2774_s23 = sld [smem:[#allocation42_spill]]  ;;  %2792 = sst [smem:[#allocation65_spill]] %s1607_s29  ;;  %v1720_v28 = vmul.f32 %v859_v32, %v1335_v63  ;;  %v1736_v29 = vmul.f32 %v859_v32, %v1327_v57 }
  0x65   :  { %2776 = sst [smem:[#allocation42_spill]] %s1511_s20  ;;  %s1541_s20 = sld [smem:[#allocation2 + $0x43]] }
  0x66   :  { %s1647_s16 = sld [smem:[#allocation2 + $0x59]]  ;;  %s1649_s19 = sld [smem:[#allocation2 + $0x5e]]  ;;  %2807 = vst [vmem:[#allocation77_spill] sm:$0xff] %v1720_v28  ;;  %2811 = vst [vmem:[#allocation81_spill] sm:$0xff] %v1736_v29 }
  0x67   :  { %s1659_s27 = sld [smem:[#allocation2 + $0x29]]  ;;  %s1661_s7 = sld [smem:[#allocation2 + $0x18]] }
  0x68   :  { %s1671_s17 = sld [smem:[#allocation2 + $0x5a]]  ;;  %s1673_s4 = sld [smem:[#allocation2 + $0x49]]  ;;  %v958_v33 = vstv %s1639_s13 }
  0x69   :  { %2758 = sst [smem:[#allocation49_spill]] %s1440_s8  ;;  %s1571_s8 = sld [smem:[#allocation2 + $0x50]]  ;;  %v1742_v18 = vmul.f32 %v958_v33, %v1331_v62 }
  0x6a   :  { %s1681_s15 = sld [smem:[#allocation2 + $0x2e]]  ;;  %s1701_s11 = sld [smem:[#allocation2 + $0x2f]] }
  0x6b   :  { %2786 = sst [smem:[#allocation62_spill]] %s1541_s20  ;;  %s1683_s20 = sld [smem:[#allocation2 + $0x5f]]  ;;  %2812 = vst [vmem:[#allocation82_spill] sm:$0xff] %v1742_v18 }
  0x6c   :  { %s1713_s2 = sld [smem:[#allocation2 + $0x30]]  ;;  %s1715_s30 = sld [smem:[#allocation2 + $0x61]]  ;;  %v964_v25 = vstv %s1649_s19 }
  0x6d   :  { %s1723_s14 = sld [smem:[#allocation2 + $0x19]]  ;;  %s1725_s29 = sld [smem:[#allocation2 + $0x4a]]  ;;  %v656_v26 = vstv %s1661_s7  ;;  %v1746_v36 = vmul.f32 %v964_v25, %v1335_v63  ;;  %v1758_v17 = vmul.f32 %v964_v25, %v1327_v57 }
  0x6e   :  { %v662_v30 = vstv %s1673_s4  ;;  %v1761_v32 = vmul.f32 %v656_v26, %v1331_v62  ;;  %v1775_v14 = vmul.f32 %v656_v26, %v1322_v52  ;;  %s2828_s13 = sld [smem:[#allocation18_spill]]  ;;  %s2830_s7 = sld [smem:[#allocation20_spill]] }
  0x6f   :  { %v754_v45 = vstv %s1571_s8  ;;  %s1703_s8 = sld [smem:[#allocation2 + $0x60]]  ;;  %2813 = vst [vmem:[#allocation83_spill] sm:$0xff] %v1746_v36  ;;  %2816 = vst [vmem:[#allocation85_spill] sm:$0xff] %v1758_v17  ;;  %v1769_v24 = vmul.f32 %v662_v30, %v1335_v63  ;;  %s2832_s19 = sld [smem:[#allocation21_spill]] }
  0x70   :  { %v1692_v38 = vmul.f32 %v754_v45, %v1335_v63  ;;  %v1699_v31 = vmul.f32 %v754_v45, %v1327_v57  ;;  %2804 = sst [smem:[#allocation74_spill]] %s1701_s11  ;;  %v1751_v45 = vmul.f32 %v958_v33, %v1322_v52  ;;  %2817 = vst [vmem:[#allocation86_spill] sm:$0xff] %v1761_v32  ;;  %2823 = vst [vmem:[#allocation88_spill] sm:$0xff] %v1775_v14  ;;  %s2825_s11 = sld [smem:[#allocation16_spill]] }
  0x71   :  { %2799 = sst [smem:[#allocation69_spill]] %s1683_s20  ;;  %2820 = vst [vmem:[#allocation87_spill] sm:$0xff] %v1769_v24  ;;  %v1784_v63 = vmul.f32 %v662_v30, %v1327_v57  ;;  %s2844_s4 = sld [smem:[#allocation23_spill]] }
  0x72   :  { %2801 = vst [vmem:[#allocation71_spill] sm:$0xff] %v1692_v38  ;;  %2803 = vst [vmem:[#allocation73_spill] sm:$0xff] %v1699_v31  ;;  %2806 = sst [smem:[#allocation76_spill]] %s1715_s30  ;;  %s2826_s30 = sld [smem:[#allocation17_spill]] }
  0x73   :  { %2808 = sst [smem:[#allocation78_spill]] %s1723_s14  ;;  %2814 = vst [vmem:[#allocation84_spill] sm:$0xff] %v1751_v45  ;;  %2824 = vst [vmem:[#allocation89_spill] sm:$0xff] %v1784_v63  ;;  %s2833_s14 = sld [smem:[#allocation22_spill]] }
  0x74   :  { %2809 = sst [smem:[#allocation79_spill]] %s1725_s29  ;;  %s2829_s29 = sld [smem:[#allocation19_spill]]  ;;  %v2843_v14 = vstv %s2828_s13 }
  0x75   :  { %s2850_s20 = sld [smem:[#allocation24_spill]]  ;;  %s2862_s13 = sld [smem:[#allocation27_spill]] }
  0x78   :  { %v2839_v5 = vstv %s2826_s30  ;;  %s2855_s30 = sld [smem:[#allocation25_spill]] }
  0x79   :  { %v2841_v6 = vmov %v2839_v5  ;;  %v2854_v18 = vstv %s2833_s14  ;;  %s2867_s14 = sld [smem:[#allocation30_spill]] }
  0x7b   :  { %v2866_v28 = vstv %s2850_s20  ;;  %s2881_s20 = sld [smem:[#allocation36_spill]] }
  0x81   :  { %v2901_v21 = vstv %s2881_s20  ;;  %s2926_s20 = sld [smem:[#allocation46_spill]] }
  0x82   :  { %v2903_v22 = vmov %v2901_v21 }
  0x87   :  { %v2947_v37 = vstv %s2926_s20  ;;  %s2983_s20 = sld [smem:[#allocation57_spill]] }
  0xa2   :  { %v1705_v59 = vpop.permute.xlu1 %153  ;;  %v135_v3 = vpop.permute.xlu0 %134 }
  0xa6   :  { %v249_v23 = vpop.permute.xlu1 %248 }
  0xa7   :  { %v133_v44 = vpop.permute.xlu0 %132 }
  0xa8   :  { %v137_v19 = vsel %vm136_vm2, %v133_v44, %v135_v3  ;;  %v138_v20 = vsel %vm136_vm2, %v135_v3, %v133_v44 }
  0xa9   :  { %v141_v33 = vsel %vm126_vm3, %v137_v19, 0.0  ;;  %v142_v3 = vsel %vm127_vm4, %v138_v20, 0.0 }
  0xaa   :  { %v259_v25 = vpop.permute.xlu1 %258  ;;  %v1779_v19 = vmul.f32 %v309_v7, %v141_v33  ;;  %v1788_v16 = vmul.f32 %v309_v7, %v142_v3  ;;  %v1792_v62 = vmul.f32 %v414_v8, %v141_v33  ;;  %v1796_v52 = vmul.f32 %v414_v8, %v142_v3 }
  0xab   :  { %v247_v20 = vpop.permute.xlu0 %246  ;;  %v1800_v26 = vmul.f32 %v519_v9, %v141_v33  ;;  %v1804_v44 = vmul.f32 %v519_v9, %v142_v3  ;;  %v1808_v57 = vmul.f32 %v624_v10, %v141_v33  ;;  %v1814_v8 = vmul.f32 %v624_v10, %v142_v3 }
  0xac   :  { %v250_v7 = vsel %vm136_vm2, %v247_v20, %v249_v23  ;;  %v251_v30 = vsel %vm136_vm2, %v249_v23, %v247_v20  ;;  %v1818_v13 = vmul.f32 %v716_v11, %v141_v33  ;;  %v1826_v23 = vmul.f32 %v716_v11, %v142_v3 }
  0xad   :  { %2827 = vst [vmem:[#allocation90_spill] sm:$0xff] %v1804_v44  ;;  %v254_v9 = vsel %vm126_vm3, %v250_v7, 0.0  ;;  %v255_v15 = vsel %vm127_vm4, %v251_v30, 0.0  ;;  %v2835_v10 = vstv %s2825_s11  ;;  %v1838_v63 = vmul.f32 %v2839_v5, %v141_v33  ;;  %s2858_s11 = sld [smem:[#allocation26_spill]] }
  0xae   :  { %2831 = vst [vmem:[#allocation91_spill] sm:$0xff] %v1818_v13  ;;  %v173_v12 = vpop.permute.xlu1 %172  ;;  %2834 = vst [vmem:[#allocation92_spill] sm:$0xff] %v1826_v23  ;;  %v1830_v20 = vmul.f32 %v2835_v10, %v141_v33  ;;  %v2837_v2 = vmov %v2835_v10  ;;  %v1842_v30 = vmul.f32 %v2841_v6, %v142_v3  ;;  %v1846_v24 = vmul.f32 %v2843_v14, %v254_v9 }
  0xaf   :  { %v1834_v1 = vmul.f32 %v2837_v2, %v142_v3  ;;  %2840 = vst [vmem:[#allocation95_spill] sm:$0xff] %v1838_v63  ;;  %v257_v7 = vpop.permute.xlu0 %256  ;;  %v2845_v11 = vmov %v2843_v14  ;;  %v2846_v10 = vstv %s2829_s29  ;;  %v2848_v33 = vstv %s2830_s7  ;;  %s2857_s29 = sld [smem:[#allocation28_spill]]  ;;  %s2872_s7 = sld [smem:[#allocation31_spill]] }
  0xb0   :  { %2836 = vst [vmem:[#allocation93_spill] sm:$0xff] %v1830_v20  ;;  %2842 = vst [vmem:[#allocation96_spill] sm:$0xff] %v1842_v30  ;;  %v1850_v32 = vmul.f32 %v2845_v11, %v255_v15  ;;  %v1854_v17 = vmul.f32 %v2846_v10, %v254_v9  ;;  %v2847_v2 = vmov %v2846_v10  ;;  %v1862_v5 = vmul.f32 %v2848_v33, %v254_v9 }
  0xb1   :  { %2838 = vst [vmem:[#allocation94_spill] sm:$0xff] %v1834_v1  ;;  %v1858_v45 = vmul.f32 %v2847_v2, %v255_v15  ;;  %v2849_v63 = vmov %v2848_v33  ;;  %v2852_v6 = vstv %s2832_s19  ;;  %v1874_v10 = vmul.f32 %v2854_v18, %v254_v9  ;;  %s2876_s19 = sld [smem:[#allocation32_spill]] }
  0xb2   :  { %v1866_v3 = vmul.f32 %v2849_v63, %v255_v15  ;;  %v629_v14 = vmul.f32 %v2852_v6, %v254_v9  ;;  %v2853_v36 = vmov %v2852_v6  ;;  %v260_v2 = vsel %vm155_vm5, %v257_v7, %v259_v25  ;;  %v152_v30 = vpop.permute.xlu1 %151 }
  0xb3   :  { %v630_v11 = vmul.f32 %v2853_v36, %v255_v15  ;;  %2856 = vst [vmem:[#allocation98_spill] sm:$0xff] %v1874_v10  ;;  %v261_v33 = vsel %vm155_vm5, %v259_v25, %v257_v7  ;;  %v2859_v63 = vmov %v2854_v18  ;;  %v2861_v6 = vstv %s2844_s4  ;;  %v171_v7 = vpop.permute.xlu0 %170  ;;  %s2880_s4 = sld [smem:[#allocation33_spill]] }
  0xb4   :  { %2851 = vst [vmem:[#allocation97_spill] sm:$0xff] %v1866_v3  ;;  %v1882_v36 = vmul.f32 %v2859_v63, %v255_v15  ;;  %v1886_v18 = vmul.f32 %v2861_v6, %v254_v9  ;;  %v264_v29 = vsel %vm145_vm6, %v260_v2, 0.0  ;;  %v265_v25 = vsel %vm146_vm7, %v261_v33, 0.0 }
  0xb5   :  { %v2864_v27 = vmov %v2861_v6  ;;  %v1898_v41 = vmul.f32 %v2866_v28, %v254_v9  ;;  %v2869_v63 = vmov %v2866_v28  ;;  %v156_v6 = vsel %vm155_vm5, %v152_v30, %v1705_v59 }
  0xb6   :  { %2860 = vst [vmem:[#allocation99_spill] sm:$0xff] %v1882_v36  ;;  %2863 = vst [vmem:[#allocation100_spill] sm:$0xff] %v1886_v18  ;;  %v1894_v20 = vmul.f32 %v2864_v27, %v255_v15  ;;  %v1902_v1 = vmul.f32 %v2869_v63, %v255_v15  ;;  %v2871_v2 = vstv %s2855_s30  ;;  %v2873_v33 = vstv %s2857_s29  ;;  %s2889_s30 = sld [smem:[#allocation34_spill]]  ;;  %s2893_s29 = sld [smem:[#allocation35_spill]] }
  0xb7   :  { %2868 = vst [vmem:[#allocation102_spill] sm:$0xff] %v1898_v41  ;;  %v1908_v18 = vmul.f32 %v2871_v2, %v264_v29  ;;  %v639_v31 = vmul.f32 %v2873_v33, %v264_v29  ;;  %v2874_v39 = vmov %v2873_v33  ;;  %v157_v28 = vsel %vm155_vm5, %v1705_v59, %v152_v30 }
  0xb8   :  { %2865 = vst [vmem:[#allocation101_spill] sm:$0xff] %v1894_v20  ;;  %2870 = vst [vmem:[#allocation103_spill] sm:$0xff] %v1902_v1  ;;  %v640_v27 = vmul.f32 %v2874_v39, %v265_v25  ;;  %v2875_v9 = vmov %v2871_v2  ;;  %v2877_v63 = vstv %s2858_s11  ;;  %v2879_v2 = vstv %s2862_s13  ;;  %v269_v39 = vpop.permute.xlu1 %268  ;;  %s2902_s11 = sld [smem:[#allocation37_spill]]  ;;  %s2904_s13 = sld [smem:[#allocation39_spill]] }
  0xb9   :  { %v1918_v15 = vmul.f32 %v2875_v9, %v265_v25  ;;  %v1922_v41 = vmul.f32 %v2877_v63, %v264_v29  ;;  %v2878_v1 = vmov %v2877_v63  ;;  %v1930_v33 = vmul.f32 %v2879_v2, %v264_v29 }
  0xba   :  { %v1926_v20 = vmul.f32 %v2878_v1, %v265_v25  ;;  %v2882_v10 = vmov %v2879_v2  ;;  %v1936_v30 = vadd.f32 %v639_v31, %v629_v14  ;;  %v1938_v9 = vadd.f32 %v640_v27, %v630_v11  ;;  %v267_v1 = vpop.permute.xlu0 %266 }
  0xbb   :  { %v1934_v59 = vmul.f32 %v2882_v10, %v265_v25  ;;  %v2886_v13 = vstv %s2867_s14  ;;  %v2891_v2 = vstv %s2872_s7  ;;  %v160_v31 = vsel %vm145_vm6, %v156_v6, 0.0  ;;  %s2909_s14 = sld [smem:[#allocation40_spill]]  ;;  %s2913_s7 = sld [smem:[#allocation41_spill]] }
  0xbc   :  { %2884 = vst [vmem:[#allocation105_spill] sm:$0xff] %v1936_v30  ;;  %2885 = vst [vmem:[#allocation106_spill] sm:$0xff] %v1938_v9  ;;  %v1942_v63 = vmul.f32 %v2886_v13, %v264_v29  ;;  %v2888_v38 = vmov %v2886_v13  ;;  %v1950_v36 = vmul.f32 %v2891_v2, %v264_v29  ;;  %v161_v14 = vsel %vm146_vm7, %v157_v28, 0.0 }
  0xbd   :  { %2883 = vst [vmem:[#allocation104_spill] sm:$0xff] %v1934_v59  ;;  %v1946_v54 = vmul.f32 %v2888_v38, %v265_v25  ;;  %v2894_v11 = vmov %v2891_v2  ;;  %v2896_v10 = vstv %s2876_s19  ;;  %v175_v2 = vsel %vm174_vm8, %v171_v7, %v173_v12  ;;  %s2921_s19 = sld [smem:[#allocation43_spill]] }
  0xbe   :  { %2887 = vst [vmem:[#allocation107_spill] sm:$0xff] %v1942_v63  ;;  %2892 = vst [vmem:[#allocation109_spill] sm:$0xff] %v1950_v36  ;;  %v1958_v13 = vmul.f32 %v2894_v11, %v265_v25  ;;  %v1962_v27 = vmul.f32 %v2896_v10, %v264_v29  ;;  %v2898_v30 = vmov %v2896_v10  ;;  %v2900_v9 = vstv %s2880_s4  ;;  %v200_v29 = vpop.permute.xlu1 %199  ;;  %s2924_s4 = sld [smem:[#allocation45_spill]] }
  0xbf   :  { %2890 = vst [vmem:[#allocation108_spill] sm:$0xff] %v1946_v54  ;;  %v1966_v38 = vmul.f32 %v2898_v30, %v265_v25  ;;  %v1971_v36 = vmul.f32 %v2900_v9, %v160_v31  ;;  %v633_v6 = vmul.f32 %v2901_v21, %v160_v31  ;;  %v634_v28 = vmul.f32 %v2903_v22, %v161_v14 }
  0xc0   :  { %2895 = vst [vmem:[#allocation110_spill] sm:$0xff] %v1958_v13  ;;  %2897 = vst [vmem:[#allocation111_spill] sm:$0xff] %v1962_v27  ;;  %v176_v11 = vsel %vm174_vm8, %v173_v12, %v171_v7  ;;  %v2905_v10 = vmov %v2900_v9  ;;  %v2906_v25 = vstv %s2889_s30  ;;  %v2908_v13 = vstv %s2893_s29  ;;  %v198_v12 = vpop.permute.xlu0 %197  ;;  %s2931_s30 = sld [smem:[#allocation47_spill]]  ;;  %s2935_s29 = sld [smem:[#allocation48_spill]] }
  0xc1   :  { %2899 = vst [vmem:[#allocation112_spill] sm:$0xff] %v1966_v38  ;;  %v1980_v27 = vmul.f32 %v2905_v10, %v161_v14  ;;  %v1984_v30 = vmul.f32 %v2906_v25, %v160_v31  ;;  %v2907_v38 = vmov %v2906_v25  ;;  %v1992_v21 = vmul.f32 %v2908_v13, %v160_v31 }
  0xc2   :  { %v1988_v9 = vmul.f32 %v2907_v38, %v161_v14  ;;  %v2910_v7 = vmov %v2908_v13  ;;  %v2001_v10 = vadd.f32 %v633_v6, %v1808_v57  ;;  %v2004_v38 = vadd.f32 %v634_v28, %v1814_v8 }
  0xc3   :  { %v1998_v22 = vmul.f32 %v2910_v7, %v161_v14  ;;  %v2915_v25 = vstv %s2902_s11  ;;  %v2919_v23 = vstv %s2904_s13  ;;  %v2020_v57 = vsel %vm164_vm9, %v175_v2, 0.0  ;;  %s2940_s11 = sld [smem:[#allocation49_spill]]  ;;  %s2950_s13 = sld [smem:[#allocation52_spill]] }
  0xc4   :  { %2912 = vst [vmem:[#allocation114_spill] sm:$0xff] %v2001_v10  ;;  %2914 = vst [vmem:[#allocation115_spill] sm:$0xff] %v2004_v38  ;;  %v2008_v13 = vmul.f32 %v2915_v25, %v160_v31  ;;  %v2917_v63 = vmov %v2915_v25  ;;  %v2016_v7 = vmul.f32 %v2919_v23, %v160_v31  ;;  %v2024_v8 = vsel %vm165_vm10, %v176_v11, 0.0  ;;  %v281_v11 = vpop.permute.xlu1 %280 }
  0xc5   :  { %2911 = vst [vmem:[#allocation113_spill] sm:$0xff] %v1998_v22  ;;  %v2012_v54 = vmul.f32 %v2917_v63, %v161_v14  ;;  %2922 = vst [vmem:[#allocation119_spill] sm:$0xff] %v2020_v57  ;;  %v2925_v63 = vmov %v2919_v23  ;;  %v2928_v6 = vstv %s2909_s14  ;;  %v270_v2 = vsel %vm174_vm8, %v267_v1, %v269_v39  ;;  %s2953_s14 = sld [smem:[#allocation53_spill]] }
  0xc6   :  { %2916 = vst [vmem:[#allocation116_spill] sm:$0xff] %v2008_v13  ;;  %2920 = vst [vmem:[#allocation118_spill] sm:$0xff] %v2016_v7  ;;  %v2030_v23 = vmul.f32 %v2925_v63, %v161_v14  ;;  %v2034_v28 = vmul.f32 %v2928_v6, %v160_v31  ;;  %v271_v25 = vsel %vm174_vm8, %v269_v39, %v267_v1  ;;  %v2930_v10 = vmov %v2928_v6  ;;  %v279_v39 = vpop.permute.xlu0 %278 }
  0xc7   :  { %2918 = vst [vmem:[#allocation117_spill] sm:$0xff] %v2012_v54  ;;  %2923 = vst [vmem:[#allocation120_spill] sm:$0xff] %v2024_v8  ;;  %v2040_v38 = vmul.f32 %v2930_v10, %v161_v14  ;;  %v2933_v7 = vstv %s2913_s7  ;;  %v2936_v31 = vstv %s2774_s23  ;;  %v2938_v14 = vstv %s2921_s19  ;;  %s2945_s23 = sld [smem:[#allocation50_spill]]  ;;  %s2958_s7 = sld [smem:[#allocation54_spill]] }
  0xc8   :  { %2927 = vst [vmem:[#allocation121_spill] sm:$0xff] %v2030_v23  ;;  %2929 = vst [vmem:[#allocation122_spill] sm:$0xff] %v2034_v28  ;;  %v330_v13 = vmul.f32 %v2933_v7, %v2020_v57  ;;  %v2934_v63 = vmov %v2933_v7  ;;  %v2053_v6 = vmul.f32 %v2936_v31, %v2020_v57  ;;  %v2937_v1 = vmov %v2936_v31  ;;  %s2977_s19 = sld [smem:[#allocation55_spill]] }
  0xc9   :  { %2932 = vst [vmem:[#allocation123_spill] sm:$0xff] %v2040_v38  ;;  %v2048_v23 = vmul.f32 %v2934_v63, %v2024_v8  ;;  %v2058_v28 = vmul.f32 %v2937_v1, %v2024_v8  ;;  %v2063_v10 = vmul.f32 %v2938_v14, %v2020_v57  ;;  %v2939_v7 = vmov %v2938_v14 }
  0xca   :  { %v2068_v38 = vmul.f32 %v2939_v7, %v2024_v8  ;;  %v2942_v63 = vstv %s2924_s4  ;;  %v2083_v43 = vmul.f32 %v2947_v37, %v2020_v57  ;;  %v2087_v14 = vsel %vm164_vm9, %v270_v2, 0.0  ;;  %s2978_s4 = sld [smem:[#allocation56_spill]] }
  0xcb   :  { %v2073_v31 = vmul.f32 %v2942_v63, %v2020_v57  ;;  %v2944_v54 = vmov %v2942_v63  ;;  %2949 = vst [vmem:[#allocation128_spill] sm:$0xff] %v2087_v14  ;;  %v2091_v7 = vsel %vm165_vm10, %v271_v25, 0.0  ;;  %v2952_v63 = vmov %v2947_v37 }
  0xcc   :  { %2941 = vst [vmem:[#allocation124_spill] sm:$0xff] %v2068_v38  ;;  %v2078_v1 = vmul.f32 %v2944_v54, %v2024_v8  ;;  %2948 = vst [vmem:[#allocation127_spill] sm:$0xff] %v2083_v43  ;;  %v2096_v54 = vmul.f32 %v2952_v63, %v2024_v8  ;;  %v2955_v37 = vstv %s2931_s30  ;;  %v2960_v35 = vstv %s2935_s29  ;;  %s2987_s30 = sld [smem:[#allocation58_spill]]  ;;  %s2995_s29 = sld [smem:[#allocation60_spill]] }
  0xcd   :  { %2943 = vst [vmem:[#allocation125_spill] sm:$0xff] %v2073_v31  ;;  %2951 = vst [vmem:[#allocation129_spill] sm:$0xff] %v2091_v7  ;;  %v2101_v43 = vmul.f32 %v2955_v37, %v2020_v57  ;;  %v2957_v34 = vmov %v2955_v37  ;;  %v336_v25 = vmul.f32 %v2960_v35, %v2087_v14  ;;  %v219_v31 = vpop.permute.xlu1 %218  ;;  %vm231_vm2 = vcmp.lt.s32.totalorder %v1579_v61, 16 }
  0xce   :  { %2946 = vst [vmem:[#allocation126_spill] sm:$0xff] %v2078_v1  ;;  %2954 = vst [vmem:[#allocation130_spill] sm:$0xff] %v2096_v54  ;;  %v2106_v2 = vmul.f32 %v2957_v34, %v2024_v8  ;;  %vm232_vm3 = vcmp.lt.s32.totalorder %v1586_v0, 16  ;;  %v2961_v63 = vmov %v2960_v35  ;;  %v2962_v1 = vstv %s2940_s11  ;;  %v217_v35 = vpop.permute.xlu0 %216  ;;  %s2997_s11 = sld [smem:[#allocation61_spill]] }
  0xcf   :  { %2956 = vst [vmem:[#allocation131_spill] sm:$0xff] %v2101_v43  ;;  %v337_v54 = vmul.f32 %v2961_v63, %v2091_v7  ;;  %v2119_v37 = vmul.f32 %v2962_v1, %v2087_v14  ;;  %v2963_v57 = vmov %v2962_v1  ;;  %v2964_v34 = vstv %s2945_s23  ;;  %s1267_s23 = smov 48  }
  0xd0   :  { %2959 = vst [vmem:[#allocation132_spill] sm:$0xff] %v2106_v2  ;;  %v2124_v43 = vmul.f32 %v2963_v57, %v2091_v7  ;;  %v2129_v8 = vmul.f32 %v2964_v34, %v2087_v14  ;;  %v2965_v2 = vmov %v2964_v34  ;;  %v2967_v59 = vstv %s2950_s13  ;;  %s3005_s13 = sld [smem:[#allocation62_spill]] }
  0xd1   :  { %v2134_v38 = vmul.f32 %v2965_v2, %v2091_v7  ;;  %v2139_v63 = vmul.f32 %v2967_v59, %v2087_v14  ;;  %v2969_v1 = vmov %v2967_v59  ;;  %v2971_v57 = vstv %s2953_s14  ;;  %s3032_s14 = sld [smem:[#allocation65_spill]] }
  0xd2   :  { %v2144_v3 = vmul.f32 %v2969_v1, %v2091_v7  ;;  %v2149_v22 = vmul.f32 %v2971_v57, %v2087_v14  ;;  %v2973_v34 = vmov %v2971_v57  ;;  %v2975_v50 = vstv %s2958_s7 }
  0xd3   :  { %2966 = vst [vmem:[#allocation133_spill] sm:$0xff] %v2134_v38  ;;  %2968 = vst [vmem:[#allocation134_spill] sm:$0xff] %v2139_v63  ;;  %v2154_v44 = vmul.f32 %v2973_v34, %v2091_v7  ;;  %v2159_v2 = vmul.f32 %v2975_v50, %v2091_v7  ;;  %v202_v38 = vsel %vm201_vm11, %v198_v12, %v200_v29  ;;  %v2980_v56 = vstv %s2978_s4 }
  0xd4   :  { %2970 = vst [vmem:[#allocation135_spill] sm:$0xff] %v2144_v3  ;;  %2972 = vst [vmem:[#allocation136_spill] sm:$0xff] %v2149_v22  ;;  %v203_v59 = vsel %vm201_vm11, %v200_v29, %v198_v12  ;;  %v2165_v1 = vsel %vm193_vm12, %v202_v38, 0.0  ;;  %v282_v14 = vsel %vm201_vm11, %v279_v39, %v281_v11  ;;  %v283_v34 = vsel %vm201_vm11, %v281_v11, %v279_v39  ;;  %v291_v22 = vpop.permute.xlu1 %290 }
  0xd5   :  { %2974 = vst [vmem:[#allocation137_spill] sm:$0xff] %v2154_v44  ;;  %2976 = vst [vmem:[#allocation138_spill] sm:$0xff] %v2159_v2  ;;  %v2169_v57 = vsel %vm194_vm13, %v203_v59, 0.0  ;;  %v2175_v50 = vsel %vm193_vm12, %v282_v14, 0.0  ;;  %v2179_v29 = vsel %vm194_vm13, %v283_v34, 0.0  ;;  %v221_v12 = vsel %vm220_vm14, %v217_v35, %v219_v31  ;;  %v289_v59 = vpop.permute.xlu0 %288 }
  0xd6   :  { %v222_v38 = vsel %vm220_vm14, %v219_v31, %v217_v35  ;;  %v2185_v11 = vsel %vm212_vm15, %v221_v12, 0.0  ;;  %v292_v39 = vsel %vm220_vm14, %v289_v59, %v291_v22  ;;  %v293_v55 = vsel %vm220_vm14, %v291_v22, %v289_v59 }
  0xd7   :  { %v2189_v49 = vsel %vm213_vm0, %v222_v38, 0.0  ;;  %v2195_v14 = vsel %vm212_vm15, %v292_v39, 0.0  ;;  %v2199_v31 = vsel %vm213_vm0, %v293_v55, 0.0  ;;  %v320_v35 = vadd.f32 %v1971_v36, %v1779_v19 }
  0xd8   :  { %v326_v34 = vadd.f32 %v1908_v18, %v1846_v24  ;;  %v238_v12 = vpop.permute.xlu1 %237  ;;  %v2979_v38 = vstv %s2977_s19  ;;  %v360_v59 = vmul.f32 %v2980_v56, %v2175_v50  ;;  %v2981_v39 = vstv %s1475_s9 }
  0xd9   :  { %v354_v22 = vmul.f32 %v2979_v38, %v2165_v1  ;;  %v366_v60 = vmul.f32 %v2981_v39, %v2185_v11  ;;  %v2982_v55 = vstv %s1477_s3  ;;  %v236_v2 = vpop.permute.xlu0 %235  ;;  %v332_v44 = vadd.f32 %v330_v13, %v320_v35 }
  0xda   :  { %v372_v7 = vmul.f32 %v2982_v55, %v2195_v14  ;;  %v338_v19 = vadd.f32 %v336_v25, %v326_v34  ;;  %v321_v24 = vadd.f32 %v1980_v27, %v1788_v16  ;;  %v327_v36 = vadd.f32 %v1918_v15, %v1850_v32 }
  0xdb   :  { %v240_v18 = vsel %vm239_vm1, %v236_v2, %v238_v12  ;;  %v241_v38 = vsel %vm239_vm1, %v238_v12, %v236_v2  ;;  %v2984_v56 = vstv %s2977_s19  ;;  %v2985_v55 = vstv %s2978_s4 }
  0xdc   :  { %v355_v39 = vmul.f32 %v2984_v56, %v2169_v57  ;;  %v361_v13 = vmul.f32 %v2985_v55, %v2179_v29  ;;  %v2231_v25 = vsel %vm231_vm2, %v240_v18, 0.0  ;;  %v2235_v16 = vsel %vm232_vm3, %v241_v38, 0.0  ;;  %v301_v27 = vpop.permute.xlu1 %300 }
  0xdd   :  { %v344_v32 = vadd.f32 %v1589_v53, %v332_v44  ;;  %v350_v15 = vadd.f32 %v1592_v42, %v338_v19  ;;  %v2986_v2 = vstv %s2983_s20  ;;  %v333_v34 = vadd.f32 %v2048_v23, %v321_v24  ;;  %v299_v55 = vpop.permute.xlu0 %298 }
  0xde   :  { %v378_v35 = vmul.f32 %v2986_v2, %v2231_v25  ;;  %v339_v12 = vadd.f32 %v337_v54, %v327_v36  ;;  %v2988_v56 = vstv %s1475_s9  ;;  %v2989_v3 = vstv %s1477_s3  ;;  %s2991_s9 = sld [smem:[#allocation42_spill]]  ;;  %s2993_s3 = sld [smem:[#allocation59_spill]] }
  0xdf   :  { %v367_v18 = vmul.f32 %v2988_v56, %v2189_v49  ;;  %v356_v63 = vadd.f32 %v354_v22, %v344_v32  ;;  %v362_v38 = vadd.f32 %v360_v59, %v350_v15  ;;  %v373_v53 = vmul.f32 %v2989_v3, %v2199_v31 }
  0xe0   :  { %v2990_v42 = vmov %v2986_v2  ;;  %v302_v19 = vsel %vm239_vm1, %v299_v55, %v301_v27  ;;  %v303_v23 = vsel %vm239_vm1, %v301_v27, %v299_v55  ;;  %v345_v54 = vadd.f32 %v1601_v58, %v333_v34 }
  0xe1   :  { %v379_v44 = vmul.f32 %v2990_v42, %v2235_v16  ;;  %v351_v24 = vadd.f32 %v1604_v4, %v339_v12  ;;  %v2258_v22 = vsel %vm231_vm2, %v302_v19, 0.0  ;;  %v2262_v3 = vsel %vm232_vm3, %v303_v23, 0.0 }
  0xe2   :  { %v368_v59 = vadd.f32 %v366_v60, %v356_v63  ;;  %v374_v36 = vadd.f32 %v372_v7, %v362_v38  ;;  %v2992_v32 = vstv %s2987_s30  ;;  %v357_v27 = vadd.f32 %v355_v39, %v345_v54 }
  0xe3   :  { %v384_v15 = vmul.f32 %v2992_v32, %v2258_v22  ;;  %v363_v58 = vadd.f32 %v361_v13, %v351_v24  ;;  %v2994_v4 = vmov %v2992_v32  ;;  %v425_v34 = vadd.f32 %v1984_v30, %v1792_v62 }
  0xe4   :  { %v385_v2 = vmul.f32 %v2994_v4, %v2262_v3  ;;  %v380_v61 = vadd.f32 %v378_v35, %v368_v59  ;;  %v431_v0 = vadd.f32 %v1922_v41, %v1854_v17  ;;  %v2996_v63 = vstv %s1503_s22  ;;  %s3025_s22 = sld [smem:[#allocation63_spill]] }
  0xe5   :  { %v459_v7 = vmul.f32 %v2996_v63, %v2165_v1  ;;  %v386_v60 = vadd.f32 %v384_v15, %v374_v36  ;;  %v369_v12 = vadd.f32 %v367_v18, %v357_v27  ;;  %v375_v56 = vadd.f32 %v373_v53, %v363_v58 }
  0xe6   :  { %v2998_v39 = vstv %s1505_s12  ;;  %v437_v55 = vadd.f32 %v2053_v6, %v425_v34  ;;  %v443_v35 = vadd.f32 %v2119_v37, %v431_v0  ;;  %v2999_v62 = vstv %s2991_s9  ;;  %s1268_s12 = smov 32  }
  0xe7   :  { %v465_v13 = vmul.f32 %v2998_v39, %v2175_v50  ;;  %v471_v30 = vmul.f32 %v2999_v62, %v2185_v11  ;;  %v3000_v17 = vstv %s2993_s3  ;;  %v388_v38 = vadd.f32 %v386_v60, %v380_v61 }
  0xe8   :  { %v477_v41 = vmul.f32 %v3000_v17, %v2195_v14  ;;  %v381_v42 = vadd.f32 %v379_v44, %v369_v12  ;;  %v387_v18 = vadd.f32 %v385_v2, %v375_v56  ;;  %v3001_v53 = vstv %s2995_s29 }
  0xe9   :  { %v483_v19 = vmul.f32 %v3001_v53, %v2231_v25  ;;  %v449_v23 = vadd.f32 %v1621_v51, %v437_v55  ;;  %v455_v6 = vadd.f32 %v1630_v46, %v443_v35  ;;  %v3002_v37 = vstv %s2997_s11  ;;  %402 = vrot.lane.b32.xlu1 %v388_v38, %s1267_s23 }
  0xea   :  { %v489_v54 = vmul.f32 %v3002_v37, %v2258_v22  ;;  %v426_v24 = vadd.f32 %v1988_v9, %v1796_v52  ;;  %v389_v44 = vadd.f32 %v387_v18, %v381_v42  ;;  %v432_v59 = vadd.f32 %v1926_v20, %v1858_v45 }
  0xeb   :  { %v3003_v36 = vmov %v2996_v63  ;;  %v3004_v32 = vmov %v2998_v39  ;;  %v461_v15 = vadd.f32 %v459_v7, %v449_v23  ;;  %v467_v27 = vadd.f32 %v465_v13, %v455_v6 }
  0xec   :  { %v460_v51 = vmul.f32 %v3003_v36, %v2169_v57  ;;  %v466_v46 = vmul.f32 %v3004_v32, %v2179_v29  ;;  %v438_v58 = vadd.f32 %v2058_v28, %v426_v24  ;;  %v3006_v52 = vmov %v2999_v62  ;;  %400 = vrot.lane.b32.xlu0 %v389_v44, %s1267_s23  ;;  %v3020_v36 = vld [vmem:[#allocation104_spill] sm:$0xff] }
  0xed   :  { %v472_v9 = vmul.f32 %v3006_v52, %v2189_v49  ;;  %v444_v4 = vadd.f32 %v2124_v43, %v432_v59  ;;  %v3007_v45 = vmov %v3000_v17  ;;  %v3008_v2 = vmov %v3001_v53 }
  0xee   :  { %v478_v20 = vmul.f32 %v3007_v45, %v2199_v31  ;;  %v484_v61 = vmul.f32 %v3008_v2, %v2235_v16  ;;  %v3009_v34 = vmov %v3002_v37  ;;  %v473_v63 = vadd.f32 %v471_v30, %v461_v15  ;;  %v3017_v37 = vld [vmem:[#allocation90_spill] sm:$0xff] }
  0xef   :  { %v490_v0 = vmul.f32 %v3009_v34, %v2262_v3  ;;  %v479_v7 = vadd.f32 %v477_v41, %v467_v27  ;;  %v450_v28 = vadd.f32 %v1635_v48, %v438_v58  ;;  %v530_v60 = vadd.f32 %v1992_v21, %v1800_v26  ;;  %v3022_v58 = vld [vmem:[#allocation124_spill] sm:$0xff] }
  0xf0   :  { %v456_v43 = vadd.f32 %v1645_v40, %v444_v4  ;;  %v536_v12 = vadd.f32 %v1930_v33, %v1862_v5  ;;  %v3010_v56 = vstv %s1539_s25  ;;  %v3011_v13 = vstv %s3005_s13  ;;  %s3028_s25 = sld [smem:[#allocation64_spill]] }
  0xf1   :  { %v564_v39 = vmul.f32 %v3010_v56, %v2165_v1  ;;  %v570_v55 = vmul.f32 %v3011_v13, %v2175_v50  ;;  %v485_v35 = vadd.f32 %v483_v19, %v473_v63  ;;  %v491_v62 = vadd.f32 %v489_v54, %v479_v7  ;;  %v3018_v54 = vld [vmem:[#allocation113_spill] sm:$0xff] }
  0xf2   :  { %v462_v30 = vadd.f32 %v460_v51, %v450_v28  ;;  %v542_v48 = vadd.f32 %v2063_v10, %v530_v60  ;;  %v468_v17 = vadd.f32 %v466_v46, %v456_v43  ;;  %v548_v26 = vadd.f32 %v2129_v8, %v536_v12  ;;  %v3015_v10 = vld [vmem:[#allocation66_spill] sm:$0xff]  ;;  %v3029_v60 = vld [vmem:[#allocation67_spill] sm:$0xff] }
  0xf3   :  { %v3012_v40 = vstv %s1547_s18  ;;  %v3013_v5 = vstv %s1557_s24  ;;  %v493_v41 = vadd.f32 %v491_v62, %v485_v35  ;;  %v3014_v18 = vstv %s1559_s26  ;;  %s1269_s18 = smov 16   ;;  %s3087_s24 = sld [smem:[#allocation69_spill]] }
  0xf4   :  { %v576_v21 = vmul.f32 %v3012_v40, %v2185_v11  ;;  %v582_v33 = vmul.f32 %v3013_v5, %v2195_v14  ;;  %v474_v38 = vadd.f32 %v472_v9, %v462_v30  ;;  %v554_v42 = vadd.f32 %v1653_v47, %v542_v48  ;;  %v3019_v47 = vld [vmem:[#allocation97_spill] sm:$0xff]  ;;  %v3034_v30 = vld [vmem:[#allocation92_spill] sm:$0xff]  ;;  %s3091_s26 = sld [smem:[#allocation74_spill]] }
  0xf5   :  { %v588_v53 = vmul.f32 %v3014_v18, %v2231_v25  ;;  %v480_v19 = vadd.f32 %v478_v20, %v468_v17  ;;  %v560_v23 = vadd.f32 %v3015_v10, %v548_v26  ;;  %v3016_v8 = vstv %s1569_s0  ;;  %507 = vrot.lane.b32.xlu1 %v493_v41, %s1268_s12  ;;  %v3024_v20 = vld [vmem:[#allocation133_spill] sm:$0xff]  ;;  %s2505_s0 = sld [smem:[#allocation2 + $0x1b]] }
  0xf6   :  { %v594_v6 = vmul.f32 %v3016_v8, %v2258_v22  ;;  %v531_v24 = vadd.f32 %v3018_v54, %v3017_v37  ;;  %v486_v44 = vadd.f32 %v484_v61, %v474_v38  ;;  %v566_v59 = vadd.f32 %v564_v39, %v554_v42  ;;  %v3035_v48 = vld [vmem:[#allocation117_spill] sm:$0xff] }
  0xf7   :  { %v537_v51 = vadd.f32 %v3020_v36, %v3019_v47  ;;  %v3021_v32 = vmov %v3010_v56  ;;  %v492_v15 = vadd.f32 %v490_v0, %v480_v19  ;;  %v572_v27 = vadd.f32 %v570_v55, %v560_v23  ;;  %v3044_v36 = vld [vmem:[#allocation70_spill] sm:$0xff] }
  0xf8   :  { %v565_v46 = vmul.f32 %v3021_v32, %v2169_v57  ;;  %v543_v52 = vadd.f32 %v3022_v58, %v531_v24  ;;  %v3023_v9 = vmov %v3011_v13  ;;  %v578_v45 = vadd.f32 %v576_v21, %v566_v59  ;;  %v3031_v13 = vld [vmem:[#allocation68_spill] sm:$0xff]  ;;  %v3036_v21 = vld [vmem:[#allocation99_spill] sm:$0xff] }
  0xf9   :  { %v571_v4 = vmul.f32 %v3023_v9, %v2179_v29  ;;  %v549_v2 = vadd.f32 %v3024_v20, %v537_v51  ;;  %v3026_v61 = vmov %v3012_v40  ;;  %v3027_v63 = vmov %v3013_v5  ;;  %v3037_v5 = vld [vmem:[#allocation108_spill] sm:$0xff] }
  0xfa   :  { %v577_v34 = vmul.f32 %v3026_v61, %v2189_v49  ;;  %v583_v7 = vmul.f32 %v3027_v63, %v2199_v31  ;;  %v494_v28 = vadd.f32 %v492_v15, %v486_v44  ;;  %v584_v0 = vadd.f32 %v582_v33, %v572_v27  ;;  %v3051_v61 = vld [vmem:[#allocation107_spill] sm:$0xff] }
  0xfb   :  { %v555_v43 = vadd.f32 %v3029_v60, %v543_v52  ;;  %v3030_v12 = vmov %v3014_v18  ;;  %v590_v39 = vadd.f32 %v588_v53, %v578_v45  ;;  %v561_v55 = vadd.f32 %v3031_v13, %v549_v2  ;;  %v3039_v18 = vld [vmem:[#allocation126_spill] sm:$0xff]  ;;  %v3047_v52 = vld [vmem:[#allocation71_spill] sm:$0xff]  ;;  %v3049_v45 = vld [vmem:[#allocation116_spill] sm:$0xff] }
  0xfc   :  { %v589_v56 = vmul.f32 %v3030_v12, %v2235_v16  ;;  %v3033_v35 = vmov %v3016_v8  ;;  %v728_v17 = vadd.f32 %v3035_v48, %v3034_v30  ;;  %505 = vrot.lane.b32.xlu0 %v494_v28, %s1268_s12  ;;  %v596_v26 = vadd.f32 %v594_v6, %v584_v0  ;;  %v3042_v6 = vld [vmem:[#allocation135_spill] sm:$0xff]  ;;  %v3050_v2 = vld [vmem:[#allocation98_spill] sm:$0xff] }
  0xfd   :  { %v595_v62 = vmul.f32 %v3033_v35, %v2262_v3  ;;  %v567_v40 = vadd.f32 %v565_v46, %v555_v43  ;;  %v734_v33 = vadd.f32 %v3037_v5, %v3036_v21  ;;  %v3038_v41 = vstv %s3025_s22  ;;  %v3055_v13 = vld [vmem:[#allocation134_spill] sm:$0xff] }
  0xfe   :  { %v762_v38 = vmul.f32 %v3038_v41, %v2169_v57  ;;  %v573_v42 = vadd.f32 %v571_v4, %v561_v55  ;;  %v740_v53 = vadd.f32 %v3039_v18, %v728_v17  ;;  %v3040_v19 = vstv %s1583_s1  ;;  %v3048_v4 = vld [vmem:[#allocation91_spill] sm:$0xff]  ;;  %s3112_s1 = sld [smem:[#allocation44_spill]] }
  0xff   :  { %v768_v10 = vmul.f32 %v3040_v19, %v2179_v29  ;;  %v3041_v23 = vstv %s3028_s25  ;;  %v598_v37 = vadd.f32 %v596_v26, %v590_v39  ;;  %v579_v54 = vadd.f32 %v577_v34, %v567_v40  ;;  %v3054_v39 = vld [vmem:[#allocation125_spill] sm:$0xff] }
 0x100   :  { %v774_v8 = vmul.f32 %v3041_v23, %v2189_v49  ;;  %v746_v24 = vadd.f32 %v3042_v6, %v734_v33  ;;  %v3043_v44 = vstv %s3032_s14  ;;  %v585_v47 = vadd.f32 %v583_v7, %v573_v42  ;;  %v3059_v33 = vld [vmem:[#allocation72_spill] sm:$0xff] }
 0x101   :  { %v780_v59 = vmul.f32 %v3043_v44, %v2199_v31  ;;  %v752_v51 = vadd.f32 %v3044_v36, %v740_v53  ;;  %v3045_v32 = vstv %s1615_s5  ;;  %v3046_v15 = vstv %s1617_s10  ;;  %612 = vrot.lane.b32.xlu1 %v598_v37, %s1269_s18  ;;  %v3064_v37 = vld [vmem:[#allocation101_spill] sm:$0xff]  ;;  %s1270_s10 = smov 112   ;;  %s2507_s5 = sld [smem:[#allocation2 + $0x4c]] }
 0x102   :  { %v786_v46 = vmul.f32 %v3045_v32, %v2235_v16  ;;  %v792_v27 = vmul.f32 %v3046_v15, %v2262_v3  ;;  %v591_v58 = vadd.f32 %v589_v56, %v579_v54  ;;  %v758_v9 = vadd.f32 %v3047_v52, %v746_v24  ;;  %v3065_v54 = vld [vmem:[#allocation110_spill] sm:$0xff]  ;;  %v3069_v52 = vld [vmem:[#allocation137_spill] sm:$0xff] }
 0x103   :  { %v727_v20 = vadd.f32 %v3049_v45, %v3048_v4  ;;  %v733_v34 = vadd.f32 %v3051_v61, %v3050_v2  ;;  %v597_v63 = vadd.f32 %v595_v62, %v585_v47  ;;  %v764_v7 = vadd.f32 %v762_v38, %v752_v51  ;;  %v3060_v38 = vld [vmem:[#allocation73_spill] sm:$0xff] }
 0x104   :  { %v3052_v28 = vmov %v3038_v41  ;;  %v3053_v60 = vmov %v3040_v19  ;;  %v770_v12 = vadd.f32 %v768_v10, %v758_v9  ;;  %v3056_v35 = vmov %v3041_v23  ;;  %v3062_v10 = vld [vmem:[#allocation94_spill] sm:$0xff]  ;;  %v3063_v23 = vld [vmem:[#allocation121_spill] sm:$0xff] }
 0x105   :  { %v761_v0 = vmul.f32 %v3052_v28, %v2165_v1  ;;  %v767_v43 = vmul.f32 %v3053_v60, %v2175_v50  ;;  %v739_v56 = vadd.f32 %v3054_v39, %v727_v20  ;;  %v745_v55 = vadd.f32 %v3055_v13, %v733_v34  ;;  %v3076_v39 = vld [vmem:[#allocation93_spill] sm:$0xff] }
 0x106   :  { %v773_v30 = vmul.f32 %v3056_v35, %v2185_v11  ;;  %v599_v48 = vadd.f32 %v597_v63, %v591_v58  ;;  %v776_v17 = vadd.f32 %v774_v8, %v764_v7  ;;  %v3057_v62 = vmov %v3043_v44  ;;  %v3073_v7 = vld [vmem:[#allocation75_spill] sm:$0xff] }
 0x107   :  { %v779_v26 = vmul.f32 %v3057_v62, %v2195_v14  ;;  %v3058_v40 = vmov %v3045_v32  ;;  %v782_v5 = vadd.f32 %v780_v59, %v770_v12  ;;  %v751_v41 = vadd.f32 %v3059_v33, %v739_v56  ;;  %v3077_v56 = vld [vmem:[#allocation118_spill] sm:$0xff]  ;;  %v3081_v33 = vld [vmem:[#allocation127_spill] sm:$0xff] }
 0x108   :  { %v785_v21 = vmul.f32 %v3058_v40, %v2231_v25  ;;  %v757_v42 = vadd.f32 %v3060_v38, %v745_v55  ;;  %v3061_v18 = vmov %v3046_v15  ;;  %610 = vrot.lane.b32.xlu0 %v599_v48, %s1269_s18  ;;  %v788_v19 = vadd.f32 %v786_v46, %v776_v17  ;;  %v3068_v15 = vld [vmem:[#allocation130_spill] sm:$0xff]  ;;  %v3079_v48 = vld [vmem:[#allocation109_spill] sm:$0xff] }
 0x109   :  { %v791_v53 = vmul.f32 %v3061_v18, %v2258_v22  ;;  %v833_v8 = vadd.f32 %v3063_v23, %v3062_v10  ;;  %v839_v6 = vadd.f32 %v3065_v54, %v3064_v37  ;;  %v3066_v24 = vstv %s1625_s21  ;;  %s3113_s21 = sld [smem:[#allocation51_spill]] }
 0x10a   :  { %v867_v44 = vmul.f32 %v3066_v24, %v2169_v57  ;;  %v794_v59 = vadd.f32 %v792_v27, %v782_v5  ;;  %v763_v47 = vadd.f32 %v761_v0, %v751_v41  ;;  %v769_v36 = vadd.f32 %v767_v43, %v757_v42  ;;  %v3074_v0 = vld [vmem:[#allocation77_spill] sm:$0xff] }
 0x10b   :  { %v3067_v51 = vstv %s1627_s6  ;;  %v845_v58 = vadd.f32 %v3068_v15, %v833_v8  ;;  %v851_v46 = vadd.f32 %v3069_v52, %v839_v6  ;;  %v3070_v9 = vstv %s1637_s28  ;;  %v3086_v6 = vld [vmem:[#allocation80_spill] sm:$0xff]  ;;  %s2482_s28 = sld [smem:[#allocation2 + $0x1a]]  ;;  %s1271_s6 = smov 96  }
 0x10c   :  { %v873_v32 = vmul.f32 %v3067_v51, %v2179_v29  ;;  %v879_v4 = vmul.f32 %v3070_v9, %v2189_v49  ;;  %v3071_v45 = vstv %s1647_s16  ;;  %v796_v2 = vadd.f32 %v794_v59, %v788_v19  ;;  %v3083_v19 = vld [vmem:[#allocation136_spill] sm:$0xff]  ;;  %s3128_s16 = sld [smem:[#allocation79_spill]] }
 0x10d   :  { %v885_v20 = vmul.f32 %v3071_v45, %v2199_v31  ;;  %v775_v61 = vadd.f32 %v773_v30, %v763_v47  ;;  %v781_v27 = vadd.f32 %v779_v26, %v769_v36  ;;  %v3072_v34 = vstv %s1659_s27  ;;  %v3078_v30 = vld [vmem:[#allocation100_spill] sm:$0xff]  ;;  %v3089_v47 = vld [vmem:[#allocation81_spill] sm:$0xff]  ;;  %s3103_s27 = sld [smem:[#allocation76_spill]] }
 0x10e   :  { %v891_v63 = vmul.f32 %v3072_v34, %v2235_v16  ;;  %v857_v28 = vadd.f32 %v3073_v7, %v845_v58  ;;  %v863_v60 = vadd.f32 %v3074_v0, %v851_v46  ;;  %v3075_v43 = vstv %s1671_s17  ;;  %809 = vrot.lane.b32.xlu1 %v796_v2, %s1270_s10  ;;  %v3092_v15 = vld [vmem:[#allocation96_spill] sm:$0xff]  ;;  %v3093_v58 = vld [vmem:[#allocation123_spill] sm:$0xff]  ;;  %v3098_v0 = vld [vmem:[#allocation138_spill] sm:$0xff]  ;;  %s2498_s17 = sld [smem:[#allocation2 + $0x4b]] }
 0x10f   :  { %v897_v12 = vmul.f32 %v3075_v43, %v2262_v3  ;;  %v832_v13 = vadd.f32 %v3077_v56, %v3076_v39  ;;  %v787_v55 = vadd.f32 %v785_v21, %v775_v61  ;;  %v793_v35 = vadd.f32 %v791_v53, %v781_v27  ;;  %v3094_v46 = vld [vmem:[#allocation103_spill] sm:$0xff]  ;;  %v3097_v7 = vld [vmem:[#allocation132_spill] sm:$0xff] }
 0x110   :  { %v838_v17 = vadd.f32 %v3079_v48, %v3078_v30  ;;  %v3080_v62 = vmov %v3066_v24  ;;  %v869_v40 = vadd.f32 %v867_v44, %v857_v28  ;;  %v875_v5 = vadd.f32 %v873_v32, %v863_v60  ;;  %v3100_v56 = vld [vmem:[#allocation128_spill] sm:$0xff] }
 0x111   :  { %v866_v26 = vmul.f32 %v3080_v62, %v2165_v1  ;;  %v844_v41 = vadd.f32 %v3081_v33, %v832_v13  ;;  %v3082_v38 = vmov %v3067_v51  ;;  %v795_v18 = vadd.f32 %v793_v35, %v787_v55 }
 0x112   :  { %v872_v42 = vmul.f32 %v3082_v38, %v2175_v50  ;;  %v850_v10 = vadd.f32 %v3083_v19, %v838_v17  ;;  %v3084_v21 = vmov %v3070_v9  ;;  %v3085_v23 = vmov %v3071_v45  ;;  %v3095_v9 = vld [vmem:[#allocation112_spill] sm:$0xff]  ;;  %v3104_v17 = vld [vmem:[#allocation82_spill] sm:$0xff] }
 0x113   :  { %v878_v53 = vmul.f32 %v3084_v21, %v2185_v11  ;;  %v884_v8 = vmul.f32 %v3085_v23, %v2195_v14  ;;  %v881_v37 = vadd.f32 %v879_v4, %v869_v40  ;;  %v887_v54 = vadd.f32 %v885_v20, %v875_v5  ;;  %807 = vrot.lane.b32.xlu0 %v795_v18, %s1270_s10  ;;  %v3108_v18 = vld [vmem:[#allocation95_spill] sm:$0xff]  ;;  %v3109_v19 = vld [vmem:[#allocation122_spill] sm:$0xff] }
 0x114   :  { %v856_v24 = vadd.f32 %v3086_v6, %v844_v41  ;;  %v3088_v44 = vmov %v3072_v34  ;;  %v862_v36 = vadd.f32 %v3089_v47, %v850_v10  ;;  %v3090_v51 = vmov %v3075_v43  ;;  %v3110_v21 = vld [vmem:[#allocation102_spill] sm:$0xff] }
 0x115   :  { %v890_v59 = vmul.f32 %v3088_v44, %v2231_v25  ;;  %v896_v32 = vmul.f32 %v3090_v51, %v2258_v22  ;;  %v938_v52 = vadd.f32 %v3093_v58, %v3092_v15  ;;  %v944_v4 = vadd.f32 %v3095_v9, %v3094_v46  ;;  %v3115_v44 = vld [vmem:[#allocation131_spill] sm:$0xff] }
 0x116   :  { %v893_v45 = vadd.f32 %v891_v63, %v881_v37  ;;  %v899_v20 = vadd.f32 %v897_v12, %v887_v54  ;;  %v868_v2 = vadd.f32 %v866_v26, %v856_v24  ;;  %v3096_v61 = vstv %s1681_s15  ;;  %v3105_v26 = vld [vmem:[#allocation83_spill] sm:$0xff]  ;;  %s3126_s15 = sld [smem:[#allocation78_spill]] }
 0x117   :  { %v972_v27 = vmul.f32 %v3096_v61, %v2169_v57  ;;  %v874_v34 = vadd.f32 %v872_v42, %v862_v36  ;;  %v950_v28 = vadd.f32 %v3097_v7, %v938_v52  ;;  %v956_v60 = vadd.f32 %v3098_v0, %v944_v4  ;;  %v3118_v4 = vld [vmem:[#allocation84_spill] sm:$0xff] }
 0x118   :  { %v3099_v43 = vstv %s3087_s24  ;;  %v3101_v13 = vstv %s2958_s7  ;;  %v901_v35 = vadd.f32 %v899_v20, %v893_v45  ;;  %v880_v63 = vadd.f32 %v878_v53, %v868_v2  ;;  %v3111_v53 = vld [vmem:[#allocation111_spill] sm:$0xff]  ;;  %v3119_v20 = vld [vmem:[#allocation85_spill] sm:$0xff] }
 0x119   :  { %v978_v39 = vmul.f32 %v3099_v43, %v2179_v29  ;;  %v953_v55 = vmul.f32 %v3101_v13, %v3100_v56  ;;  %v3102_v12 = vstv %s3091_s26  ;;  %v886_v48 = vadd.f32 %v884_v8, %v874_v34 }
 0x11a   :  { %v984_v30 = vmul.f32 %v3102_v12, %v2189_v49  ;;  %v962_v62 = vadd.f32 %v3104_v17, %v950_v28  ;;  %v968_v40 = vadd.f32 %v3105_v26, %v956_v60  ;;  %v3106_v5 = vstv %s1703_s8  ;;  %914 = vrot.lane.b32.xlu1 %v901_v35, %s1271_s6  ;;  %v3122_v28 = vld [vmem:[#allocation120_spill] sm:$0xff]  ;;  %s1272_s8 = smov 80  }
 0x11b   :  { %v990_v33 = vmul.f32 %v3106_v5, %v2199_v31  ;;  %v892_v41 = vadd.f32 %v890_v59, %v880_v63  ;;  %v3107_v38 = vstv %s1713_s2  ;;  %v937_v10 = vadd.f32 %v3109_v19, %v3108_v18  ;;  %v3131_v19 = vld [vmem:[#allocation115_spill] sm:$0xff]  ;;  %s1273_s2 = smov [#allocation7]  }
 0x11c   :  { %v996_v42 = vmul.f32 %v3107_v38, %v2235_v16  ;;  %v943_v23 = vadd.f32 %v3111_v53, %v3110_v21  ;;  %v898_v8 = vadd.f32 %v896_v32, %v886_v48  ;;  %v974_v37 = vadd.f32 %v972_v27, %v962_v62  ;;  %v3132_v21 = vld [vmem:[#allocation119_spill] sm:$0xff]  ;;  %s1060_s7 = sshll.u32 %s1273_s2, 4  ;;  %s1061_s7 = int_to_ptr.vmem [resolvable:$true] %s1060_s7 }
 0x11d   :  { %v980_v54 = vadd.f32 %v978_v39, %v968_v40  ;;  %v3114_v6 = vstv %s3103_s27  ;;  %v949_v59 = vadd.f32 %v3115_v44, %v937_v10  ;;  %v3116_v36 = vmov %v3096_v61  ;;  %s1229_s19 = scalar_lea.vmem %s1061_s7, 64  ;;  %p1234_p12 = scmp.lt.s32.totalorder %s1061_s7, %s1061_s7 }
 0x11e   :  { %v1002_v24 = vmul.f32 %v3114_v6, %v2262_v3  ;;  %v955_v47 = vadd.f32 %v953_v55, %v943_v23  ;;  %v971_v51 = vmul.f32 %v3116_v36, %v2165_v1  ;;  %v3117_v15 = vmov %v3099_v43  ;;  %v3124_v43 = vld [vmem:[#allocation129_spill] sm:$0xff]  ;;  %p1230_p11 = scmp.ne.s32.totalorder %s1061_s7, %s1229_s19  ;;  %p1235_p13 = scmp.lt.s32.totalorder %s1229_s19, %s1229_s19 }
 0x11f   :  { %v977_v58 = vmul.f32 %v3117_v15, %v2175_v50  ;;  %v900_v52 = vadd.f32 %v898_v8, %v892_v41  ;;  %v986_v32 = vadd.f32 %v984_v30, %v974_v37  ;;  %v992_v46 = vadd.f32 %v990_v33, %v980_v54  ;;  %v3134_v8 = vld [vmem:[#allocation106_spill] sm:$0xff]  ;;  %v3138_v15 = vld [vmem:[#allocation87_spill] sm:$0xff] }
 0x120   :  { %v680_v9 = vstv %s2482_s28  ;;  %v961_v45 = vadd.f32 %v3118_v4, %v949_v59  ;;  %v967_v2 = vadd.f32 %v3119_v20, %v955_v47  ;;  %v3120_v61 = vmov %v3102_v12  ;;  %v3137_v47 = vld [vmem:[#allocation86_spill] sm:$0xff]  ;;  %p1236_p0 = por %p1235_p13, %p1234_p12 }
 0x121   :  { %v983_v27 = vmul.f32 %v3120_v61, %v2185_v11  ;;  %v3121_v34 = vmov %v3106_v5  ;;  %v3123_v0 = vstv %s3112_s1  ;;  %v3125_v39 = vstv %s3113_s21  ;;  %912 = vrot.lane.b32.xlu0 %v900_v52, %s1271_s6 }
 0x122   :  { %v989_v7 = vmul.f32 %v3121_v34, %v2195_v14  ;;  %v646_v60 = vmul.f32 %v3123_v0, %v3122_v28  ;;  %v652_v13 = vmul.f32 %v3125_v39, %v3124_v43  ;;  %v998_v55 = vadd.f32 %v996_v42, %v986_v32  ;;  %p1237_p1 = pnand %p1236_p0, %p1230_p11 }
 0x123   :  { %v1004_v35 = vadd.f32 %v1002_v24, %v992_v46  ;;  %v973_v63 = vadd.f32 %v971_v51, %v961_v45  ;;  %v979_v12 = vadd.f32 %v977_v58, %v967_v2  ;;  %v3127_v30 = vmov %v3107_v38  ;;  %v3139_v45 = vld [vmem:[#allocation114_spill] sm:$0xff]  ;;  %v3140_v2 = vld [vmem:[#allocation105_spill] sm:$0xff] }
 0x124   :  { %v995_v48 = vmul.f32 %v3127_v30, %v2231_v25  ;;  %v3129_v17 = vmov %v3114_v6  ;;  %v686_v40 = vstv %s2498_s17  ;;  %v692_v5 = vstv %s2505_s0 }
 0x125   :  { %v1001_v62 = vmul.f32 %v3129_v17, %v2258_v22  ;;  %v1006_v26 = vadd.f32 %v1004_v35, %v998_v55  ;;  %v698_v33 = vstv %s2507_s5  ;;  %v3130_v41 = vmov %v3125_v39 }
 0x126   :  { %v651_v38 = vmul.f32 %v3130_v41, %v3100_v56  ;;  %v985_v18 = vadd.f32 %v983_v27, %v973_v63  ;;  %v991_v42 = vadd.f32 %v989_v7, %v979_v12  ;;  %v648_v10 = vadd.f32 %v646_v60, %v3131_v19 }
 0x127   :  { %v3133_v53 = vmov %v3123_v0  ;;  %1019 = vrot.lane.b32.xlu1 %v1006_v26, %s1272_s8  ;;  %v654_v37 = vadd.f32 %v652_v13, %v3134_v8  ;;  %v3135_v54 = vstv %s3126_s15  ;;  %v3136_v24 = vstv %s3128_s16 }
 0x128   :  { %v645_v23 = vmul.f32 %v3133_v53, %v3132_v21  ;;  %v670_v6 = vmul.f32 %v3135_v54, %v2169_v57  ;;  %v676_v44 = vmul.f32 %v3136_v24, %v2179_v29  ;;  %v997_v56 = vadd.f32 %v995_v48, %v985_v18 }
 0x129   :  { %v1003_v59 = vadd.f32 %v1001_v62, %v991_v42  ;;  %v660_v36 = vadd.f32 %v3137_v47, %v648_v10  ;;  %v682_v51 = vmul.f32 %v680_v9, %v2189_v49  ;;  %v666_v58 = vadd.f32 %v3138_v15, %v654_v37 }
 0x12a   :  { %v688_v52 = vmul.f32 %v686_v40, %v2199_v31  ;;  %v694_v32 = vmul.f32 %v692_v5, %v2235_v16  ;;  %v700_v46 = vmul.f32 %v698_v33, %v2262_v3  ;;  %v647_v20 = vadd.f32 %v645_v23, %v3139_v45  ;;  %v3143_v16 = vld [vmem:[#allocation88_spill] sm:$0xff]  ;;  %v3144_v3 = vld [vmem:[#allocation89_spill] sm:$0xff] }
 0x12b   :  { %v1005_v4 = vadd.f32 %v1003_v59, %v997_v56  ;;  %v672_v57 = vadd.f32 %v670_v6, %v660_v36  ;;  %v653_v29 = vadd.f32 %v651_v38, %v3140_v2  ;;  %v678_v61 = vadd.f32 %v676_v44, %v666_v58  ;;  %v3146_v59 = vld [vmem:[#allocation38_spill] sm:$0xff] }
 0x12c   :  { %v3141_v27 = vmov %v3135_v54  ;;  %v3142_v49 = vmov %v3136_v24  ;;  %v681_v28 = vmul.f32 %v680_v9, %v2185_v11  ;;  %v659_v0 = vadd.f32 %v3143_v16, %v647_v20 }
 0x12d   :  { %v669_v34 = vmul.f32 %v3141_v27, %v2165_v1  ;;  %v675_v7 = vmul.f32 %v3142_v49, %v2175_v50  ;;  %1017 = vrot.lane.b32.xlu0 %v1005_v4, %s1272_s8  ;;  %v684_v31 = vadd.f32 %v682_v51, %v672_v57  ;;  %v665_v60 = vadd.f32 %v3144_v3, %v653_v29 }
 0x12e   :  { %v687_v43 = vmul.f32 %v686_v40, %v2195_v14  ;;  %v690_v39 = vadd.f32 %v688_v52, %v678_v61  ;;  %v693_v13 = vmul.f32 %v692_v5, %v2231_v25  ;;  %v699_v1 = vmul.f32 %v698_v33, %v2258_v22  ;;  %v3145_v14 = vld [vmem:[#allocation29_spill] sm:$0xff] }
 0x12f   :  { %v696_v55 = vadd.f32 %v694_v32, %v684_v31  ;;  %v671_v35 = vadd.f32 %v669_v34, %v659_v0  ;;  %v677_v63 = vadd.f32 %v675_v7, %v665_v60  ;;  %v495_v40 = vadd.s32 4294967264, %v3145_v14 }
 0x130   :  { %v702_v12 = vadd.f32 %v700_v46, %v690_v39  ;;  %vm509_vm4 = vcmask 261120   ;;  %v390_v25 = vadd.s32 4294967248, %v3145_v14  ;;  %v600_v5 = vadd.s32 4294967280, %v3145_v14 }
 0x131   :  { %v683_v50 = vadd.f32 %v681_v28, %v671_v35  ;;  %v689_v30 = vadd.f32 %v687_v43, %v677_v63  ;;  %vm404_vm5 = vcmask 392192   ;;  %vm614_vm6 = vcmask 130048  }
 0x132   :  { %v704_v11 = vadd.f32 %v702_v12, %v696_v55  ;;  %vm497_vm7 = vcmp.ge.s32.totalorder %v495_v40, 0  ;;  %vm392_vm8 = vcmp.ge.s32.totalorder %v390_v25, 0  ;;  %vm602_vm9 = vcmp.ge.s32.totalorder %v600_v5, 0 }
 0x133   :  { %v695_v9 = vadd.f32 %v693_v13, %v683_v50  ;;  %v701_v48 = vadd.f32 %v699_v1, %v689_v30  ;;  %v798_v47 = vadd.s32 16, %v3146_v59  ;;  %vm811_vm10 = vcmask 916480  }
 0x134   :  { %v903_v51 = vadd.s32 32, %v3146_v59  ;;  %vm916_vm11 = vcmask 785408   ;;  %v1008_v45 = vadd.s32 48, %v3146_v59  ;;  %vm1021_vm14 = vcmask 654336  }
 0x135   :  { %v703_v17 = vadd.f32 %v701_v48, %v695_v9  ;;  %vm802_vm12 = vcmp.lt.s32.totalorder %v798_v47, 256 }
 0x136   :  { %vm907_vm13 = vcmp.lt.s32.totalorder %v903_v51, 256  ;;  %vm1012_vm15 = vcmp.lt.s32.totalorder %v1008_v45, 256 }
 0x15b   :  { %v403_v62 = vpop.permute.xlu1 %402 }
 0x15e   :  { %v401_v26 = vpop.permute.xlu0 %400 }
 0x15f   :  { %v405_v42 = vsel %vm404_vm5, %v401_v26, %v403_v62  ;;  %v406_v6 = vsel %vm404_vm5, %v403_v62, %v401_v26 }
 0x160   :  { %v409_v21 = vsel %vm392_vm8, %v405_v42, 0.0 }
 0x167   :  { %v508_v41 = vpop.permute.xlu1 %507 }
 0x16e   :  { %v506_v38 = vpop.permute.xlu0 %505 }
 0x16f   :  { %v510_v18 = vsel %vm509_vm4, %v506_v38, %v508_v41  ;;  %v511_v23 = vsel %vm509_vm4, %v508_v41, %v506_v38 }
 0x170   :  { %v514_v10 = vsel %vm497_vm7, %v510_v18, 0.0  ;;  %v517_v56 = vadd.f32 %v511_v23, %v406_v6 }
 0x171   :  { %v516_v8 = vadd.f32 %v514_v10, %v409_v21 }
 0x173   :  { %v613_v22 = vpop.permute.xlu1 %612 }
 0x17a   :  { %v611_v33 = vpop.permute.xlu0 %610 }
 0x17b   :  { %v615_v19 = vsel %vm614_vm6, %v611_v33, %v613_v22  ;;  %v616_v24 = vsel %vm614_vm6, %v613_v22, %v611_v33 }
 0x17c   :  { %v619_v53 = vsel %vm602_vm9, %v615_v19, 0.0  ;;  %v622_v36 = vadd.f32 %v616_v24, %v517_v56 }
 0x17d   :  { %v621_v44 = vadd.f32 %v619_v53, %v516_v8 }
 0x17e   :  { %v714_v4 = vadd.f32 %v704_v11, %v622_v36 }
 0x17f   :  { %v713_v15 = vadd.f32 %v703_v17, %v621_v44 }
 0x180   :  { %v810_v37 = vpop.permute.xlu1 %809 }
 0x185   :  { %v808_v54 = vpop.permute.xlu0 %807 }
 0x186   :  { %v812_v32 = vsel %vm811_vm10, %v808_v54, %v810_v37  ;;  %v813_v46 = vsel %vm811_vm10, %v810_v37, %v808_v54 }
 0x187   :  { %v817_v20 = vsel %vm802_vm12, %v813_v46, 0.0  ;;  %v818_v2 = vadd.f32 %v812_v32, %v713_v15 }
 0x188   :  { %v819_v34 = vadd.f32 %v817_v20, %v714_v4 }
 0x18c   :  { %v915_v58 = vpop.permute.xlu1 %914 }
 0x193   :  { %v913_v52 = vpop.permute.xlu0 %912 }
 0x194   :  { %v918_v57 = vsel %vm916_vm11, %v915_v58, %v913_v52  ;;  %v917_v29 = vsel %vm916_vm11, %v913_v52, %v915_v58 }
 0x195   :  { %v922_v61 = vsel %vm907_vm13, %v918_v57, 0.0  ;;  %v923_v49 = vadd.f32 %v917_v29, %v818_v2 }
 0x196   :  { %v924_v28 = vadd.f32 %v922_v61, %v819_v34 }
 0x199   :  { %v1020_v27 = vpop.permute.xlu1 %1019 }
 0x19f   :  { %v1018_v7 = vpop.permute.xlu0 %1017 }
 0x1a0   :  { %v1022_v31 = vsel %vm1021_vm14, %v1018_v7, %v1020_v27  ;;  %v1023_v16 = vsel %vm1021_vm14, %v1020_v27, %v1018_v7 }
 0x1a1   :  { %v1027_v0 = vsel %vm1012_vm15, %v1023_v16, 0.0  ;;  %v1028_v3 = vadd.f32 %v1022_v31, %v923_v49 }
 0x1a2   :  { %v1029_v60 = vadd.f32 %v1027_v0, %v924_v28 }
 0x1a3   :  { %v1167_v43 = vmul.f32 -1.442695, %v1028_v3 }
 0x1a4   :  { %v1168_v39 = vmul.f32 -1.442695, %v1029_v60 }
 0x1a5   :  { %1189 = vpow2.f32 %v1167_v43 }
 0x1a6   :  { %1191 = vpow2.f32 %v1168_v39 }
 0x1af   :  { %v1190_v13 = vpop.eup %1189 }
 0x1b0   :  { %v1192_v55 = vpop.eup %1191  ;;  %v1036_v35 = vadd.f32 1.0, %v1190_v13 }
 0x1b1   :  { %v1037_v63 = vadd.f32 1.0, %v1192_v55 }
 0x1b2   :  { %1193 = vrcp.f32 %v1036_v35 }
 0x1b3   :  { %1195 = vrcp.f32 %v1037_v63 }
 0x1bc   :  { %v1194_v1 = vpop.eup %1193 }
 0x1bd   :  { %v1196_v12 = vpop.eup %1195 }
 0x1be   :  { %v1044_v50 = vcombine.low %v1194_v1, %v1196_v12 }
 0x1c0   :  { %1169 = vst.sshfl [vmem:[#allocation7] sm:$0x33 pattern:$0x76325410] %v1044_v50 }
 0x1c1   :  { %1240 = shalt.err (!%p1237_p1)
}
 0x1c2   :  { %s3147_s30 = sld [smem:[#allocation139_spill]] }
 0x1c8   :  { %s1241_s9 = scalar_lea.hbm %s3147_s30, 64 }
 0x1c9   :  { %p1242_p2 = scmp.ne.s32.totalorder %s3147_s30, %s1241_s9  ;;  %p1245_p3 = scmp.lt.u32.totalorder %s1241_s9, %s3147_s30 }
 0x1cb   :  { %p1247_p4 = pnand %p1245_p3, %p1242_p2 }
 0x1cd   :  { %1250 = shalt.err (!%p1247_p4)
}
 0x1ce   :  { %1063 = dma.vmem_to_hbm [thread:$0]  %s1061_s7, 64, %s3147_s30, [#allocation4]  }
 0x1cf   :  { %1255 = dma.done.wait [#allocation4], 64  }
 0x1d0   :  { %1256 = vsyncadd [#allocation4], 4294967232 }
 0x1d1   :  { %1067 = vsyncpa [#allocation3], 1 }
 0x1d2   :  { %1068 = vsyncpa [#allocation4], 1 }
 0x1d3   :  { %1069 = vsyncpa [#allocation5], 1 }

</bundles_post_ra>
